<compile_context>
chip_gen: v7x
topology: tpu7x:2x2x1
jax: 0.10.0
libtpu: 0.0.40
codegen_flags: <defaults>
</compile_context>

<pallas_src>
import math
from functools import partial

import jax
import jax.numpy as jnp
from jax.experimental import pallas as pl
from jax.experimental.pallas import tpu as pltpu


def _layer_norm(x, gamma, beta, eps=1e-5):
    mu = jnp.mean(x, axis=-1, keepdims=True)
    var = jnp.mean((x - mu) ** 2, axis=-1, keepdims=True)
    return (x - mu) * jax.lax.rsqrt(var + eps) * gamma + beta


def text_encoder_kernel(x_ref, m_ref, mr_ref,
                        wqkv_ref, bqkv_ref, wo_ref, vecs_ref,
                        wc1_ref, bc1_ref, wc2_ref,
                        wp_ref, bp_ref,
                        o_ref, st_ref,
                        pad1_ref, pad2_ref,
                        *, n_heads, kernel_size, n_layers):
    l = pl.program_id(1)

    # Layer 0: load the (already masked) embedding block into the persistent
    # output tile; it stays resident in VMEM across the whole layer axis.
    @pl.when(l == 0)
    def _():
        o_ref[...] = x_ref[...]

    x3 = o_ref[...]                                # (Bt, T, H) f32 activation state
    Bt, T, H = x3.shape
    M = Bt * T
    dh = H // n_heads
    K = kernel_size
    F = wc1_ref.shape[-1]
    pad_l = (K - 1) // 2
    pad_r = K // 2

    x = x3.reshape(M, H)                           # fold Bt into the matmul M dim
    m3 = m_ref[...]                                # (Bt, T, 1)
    mr3 = mr_ref[...]                              # (Bt, 1, T)
    m = m3.reshape(M, 1)

    vecs = vecs_ref[0]                             # (6, H) f32 packed small vectors
    bo, g1, be1 = vecs[0:1], vecs[1:2], vecs[2:3]
    bc2, g2, be2 = vecs[3:4], vecs[4:5], vecs[5:6]

    # ---------------- masked multi-head self-attention ----------------
    # 1/sqrt(dh) is pre-folded into the Q columns of wqkv/bqkv at pack time.
    xb = x.astype(jnp.bfloat16)
    qkv = (jnp.dot(xb, wqkv_ref[0],
                   preferred_element_type=jnp.float32)
           + bqkv_ref[0]).astype(jnp.bfloat16)     # (M, 3H), single bf16 cast
    qkv3 = qkv.reshape(Bt, T, 3 * H)

    attn_valid = (m3 * mr3) > 0.0                  # (Bt, T, T), once per step

    heads = []
    for h in range(n_heads):
        qh = qkv3[:, :, h * dh:(h + 1) * dh]
        kh = qkv3[:, :, H + h * dh:H + (h + 1) * dh]
        vh = qkv3[:, :, 2 * H + h * dh:2 * H + (h + 1) * dh]
        s = jnp.einsum('bqd,bkd->bqk', qh, kh,
                       preferred_element_type=jnp.float32)            # (Bt, T, T)
        s = jnp.where(attn_valid, s, -1e4)         # VITS masked_fill value
        p = jnp.exp(s - jnp.max(s, axis=-1, keepdims=True))
        inv = pl.reciprocal(jnp.sum(p, axis=-1, keepdims=True), approx=True)
        hout = jnp.einsum('bqk,bkd->bqd', p.astype(jnp.bfloat16), vh,
                          preferred_element_type=jnp.float32) * inv   # (Bt, T, dh)
        heads.append(hout)

    # head concat + single fused output projection (one MXU pass, K = H)
    yh = jnp.concatenate(heads, axis=-1).reshape(M, H).astype(jnp.bfloat16)
    y = jnp.dot(yh, wo_ref[0], preferred_element_type=jnp.float32) + bo

    x1 = _layer_norm(x + y, g1, be1)               # (M, H)

    # -------- FFN: conv1d -> relu -> conv1d ("same" padding via padded scratch) --------
    # Pad rows are zeroed only once per batch block (never overwritten later).
    if pad_l + pad_r > 0:
        @pl.when(l == 0)
        def _():
            if pad_l > 0:
                pad1_ref[:, 0:pad_l, :] = jnp.zeros((Bt, pad_l, H), pad1_ref.dtype)
                pad2_ref[:, 0:pad_l, :] = jnp.zeros((Bt, pad_l, F), pad2_ref.dtype)
            if pad_r > 0:
                pad1_ref[:, pad_l + T:pad_l + T + pad_r, :] = \
                    jnp.zeros((Bt, pad_r, H), pad1_ref.dtype)
                pad2_ref[:, pad_l + T:pad_l + T + pad_r, :] = \
                    jnp.zeros((Bt, pad_r, F), pad2_ref.dtype)

    pad1_ref[:, pad_l:pad_l + T, :] = (x1 * m).reshape(Bt, T, H).astype(pad1_ref.dtype)
    h1 = jnp.dot(pad1_ref[:, 0:T, :].reshape(M, H), wc1_ref[0, 0],
                 preferred_element_type=jnp.float32)
    for tap in range(1, K):
        h1 = h1 + jnp.dot(pad1_ref[:, tap:tap + T, :].reshape(M, H), wc1_ref[0, tap],
                          preferred_element_type=jnp.float32)
    h1 = jnp.maximum(h1 + bc1_ref[0], 0.0)         # (M, F)

    pad2_ref[:, pad_l:pad_l + T, :] = (h1 * m).reshape(Bt, T, F).astype(pad2_ref.dtype)
    y2 = jnp.dot(pad2_ref[:, 0:T, :].reshape(M, F), wc2_ref[0, 0],
                 preferred_element_type=jnp.float32)
    for tap in range(1, K):
        y2 = y2 + jnp.dot(pad2_ref[:, tap:tap + T, :].reshape(M, F), wc2_ref[0, tap],
                          preferred_element_type=jnp.float32)
    y2 = (y2 + bc2) * m

    x2 = _layer_norm(x1 + y2, g2, be2)             # (M, H)
    o_ref[...] = x2.reshape(Bt, T, H).astype(o_ref.dtype)

    # -------- final mask + 1x1 proj conv, fused into the last layer step --------
    @pl.when(l == n_layers - 1)
    def _():
        xf = x2 * m                                # Encoder's trailing x * x_mask
        o_ref[...] = xf.reshape(Bt, T, H).astype(o_ref.dtype)
        st = (jnp.dot(xf.astype(jnp.bfloat16), wp_ref[...],
                      preferred_element_type=jnp.float32) + bp_ref[...]) * m
        st_ref[...] = st.reshape(Bt, T, st.shape[-1]).astype(st_ref.dtype)


def _pick_batch_block(B, T, target_m=256, attn_budget=8 << 20):
    """Largest divisor Bt of B so Bt*T fills the MXU M dim without blowing
    the (Bt, T, T) f32 attention-temporary budget."""
    best = 1
    for cand in range(1, B + 1):
        if B % cand != 0:
            continue
        if cand * T > max(target_m, T):
            continue
        if cand * T * T * 4 > attn_budget:
            continue
        best = cand
    return best


def _vmem_limit_bytes(Bt, T, H, F, K, C2):
    bf16, f32 = 2, 4
    # streamed per-layer weights (double-buffered by the BlockSpec pipeline)
    w_layer = (H * 3 * H + H * H + K * H * F + K * F * H) * bf16 \
        + (3 * H + 6 * H + F) * f32
    # activation / mask / output blocks (double-buffered)
    act = 2 * (Bt * T * H * f32 + 2 * Bt * T * f32
               + Bt * T * H * f32 + Bt * T * C2 * f32)
    scratch = Bt * (T + K - 1) * (H + F) * bf16
    # live f32 temporaries: qkv, scores/probs/mask, FFN hidden
    tmp = Bt * T * 3 * H * f32 + 3 * Bt * T * T * f32 + 2 * Bt * T * F * f32
    total = 2 * w_layer + act + scratch + tmp + (8 << 20)  # headroom
    # keep well under v7x's 64 MiB/core VMEM; floor so tiny problems still pipeline
    return int(min(max(total, 16 << 20), 40 << 20))


def text_encoder_forward(ids, x_lengths, params, *, n_heads, kernel_size, block_b=None):
    emb = params["emb"]
    H = emb.shape[1]
    B, T = ids.shape
    L = params["wqkv"].shape[0]
    K = kernel_size
    F = params["wc1"].shape[-1]
    C2 = params["proj_w"].shape[-1]

    # glue: embedding gather + scale, sequence mask (both layouts)
    x = emb[ids].astype(jnp.float32) * math.sqrt(H)                     # (B, T, H)
    mask = (jnp.arange(T)[None, :] < x_lengths[:, None]).astype(jnp.float32)[..., None]
    mask_row = jnp.transpose(mask, (0, 2, 1))                           # (B, 1, T)
    x = x * mask

    Bt = block_b if block_b is not None else _pick_batch_block(B, T)
    assert B % Bt == 0, "batch block must divide batch size"

    kernel = partial(text_encoder_kernel, n_heads=n_heads, kernel_size=K, n_layers=L)

    grid_spec = pltpu.PrefetchScalarGridSpec(
        num_scalar_prefetch=0,
        grid=(B // Bt, L),
        in_specs=[
            pl.BlockSpec((Bt, T, H), lambda b, l: (b, 0, 0)),           # x (read at l==0)
            pl.BlockSpec((Bt, T, 1), lambda b, l: (b, 0, 0)),           # mask (T,1)
            pl.BlockSpec((Bt, 1, T), lambda b, l: (b, 0, 0)),           # mask (1,T)
            pl.BlockSpec((1, H, 3 * H), lambda b, l: (l, 0, 0)),        # fused Wqkv
            pl.BlockSpec((1, 1, 3 * H), lambda b, l: (l, 0, 0)),        # fused bqkv
            pl.BlockSpec((1, H, H), lambda b, l: (l, 0, 0)),            # Wo (fused heads)
            pl.BlockSpec((1, 6, H), lambda b, l: (l, 0, 0)),            # packed vectors
            pl.BlockSpec((1, K, H, F), lambda b, l: (l, 0, 0, 0)),      # FFN conv1 W
            pl.BlockSpec((1, 1, F), lambda b, l: (l, 0, 0)),            # FFN conv1 b
            pl.BlockSpec((1, K, F, H), lambda b, l: (l, 0, 0, 0)),      # FFN conv2 W
            pl.BlockSpec((H, C2), lambda b, l: (0, 0)),                 # proj W
            pl.BlockSpec((1, C2), lambda b, l: (0, 0)),                 # proj b
        ],
        out_specs=(
            pl.BlockSpec((Bt, T, H), lambda b, l: (b, 0, 0)),           # encoder output
            pl.BlockSpec((Bt, T, C2), lambda b, l: (b, 0, 0)),          # proj stats
        ),
        scratch_shapes=[
            pltpu.VMEM((Bt, T + K - 1, H), jnp.bfloat16),               # padded conv1 in
            pltpu.VMEM((Bt, T + K - 1, F), jnp.bfloat16),               # padded conv2 in
        ],
    )

    x_enc, stats = pl.pallas_call(
        kernel,
        out_shape=(jax.ShapeDtypeStruct((B, T, H), jnp.float32),
                   jax.ShapeDtypeStruct((B, T, C2), jnp.float32)),
        grid_spec=grid_spec,
        compiler_params=pltpu.CompilerParams(
            dimension_semantics=("parallel", "arbitrary"),
            vmem_limit_bytes=_vmem_limit_bytes(Bt, T, H, F, K, C2)),
    )(x, mask, mask_row,
      params["wqkv"], params["bqkv"], params["wo"], params["vecs"],
      params["wc1"], params["bc1"], params["wc2"],
      params["proj_w"], params["proj_b"])

    m_out, logs = jnp.split(stats, 2, axis=-1)

    # glue: back to the PyTorch (B, C, T) convention
    return (jnp.transpose(x_enc, (0, 2, 1)),
            jnp.transpose(m_out, (0, 2, 1)),
            jnp.transpose(logs, (0, 2, 1)),
            jnp.transpose(mask, (0, 2, 1)))


def init_params(key, *, n_vocab, hidden, filter_channels, out_channels,
                n_heads, n_layers, kernel_size):
    H, F, K = hidden, filter_channels, kernel_size
    dh = H // n_heads
    scale = 1.0 / math.sqrt(dh)
    state = {"key": key}

    def nxt():
        state["key"], sub = jax.random.split(state["key"])
        return sub

    def rnd(shape, s):
        return jax.random.normal(nxt(), shape, jnp.float32) * s

    emb = rnd((n_vocab, H), H ** -0.5)           # nn.init.normal_(emb.weight, 0, H**-0.5)
    wqkv, bqkv, wo, vecs, wc1, bc1, wc2 = [], [], [], [], [], [], []
    for _ in range(n_layers):
        # 1/sqrt(dh) folded into the Q columns at pack time
        wq, wk, wv = rnd((H, H), 0.1) * scale, rnd((H, H), 0.1), rnd((H, H), 0.1)
        bq, bk, bv = rnd((1, H), 0.01) * scale, rnd((1, H), 0.01), rnd((1, H), 0.01)
        wqkv.append(jnp.concatenate([wq, wk, wv], axis=1))
        bqkv.append(jnp.concatenate([bq, bk, bv], axis=1))
        wo.append(rnd((H, H), 0.1))               # applied to the head concat
        vecs.append(jnp.concatenate([
            rnd((1, H), 0.01),                    # attn output bias
            jnp.ones((1, H), jnp.float32),        # LN1 gamma
            jnp.zeros((1, H), jnp.float32),       # LN1 beta
            rnd((1, H), 0.01),                    # FFN conv2 bias
            jnp.ones((1, H), jnp.float32),        # LN2 gamma
            jnp.zeros((1, H), jnp.float32),       # LN2 beta
        ], axis=0))
        wc1.append(rnd((K, H, F), 0.1))
        bc1.append(rnd((1, F), 0.01))
        wc2.append(rnd((K, F, H), 0.1))

    return {
        "emb": emb,
        "wqkv": jnp.stack(wqkv).astype(jnp.bfloat16),     # (L, H, 3H)
        "bqkv": jnp.stack(bqkv),                          # (L, 1, 3H) f32
        "wo": jnp.stack(wo).astype(jnp.bfloat16),         # (L, H, H)
        "vecs": jnp.stack(vecs),                          # (L, 6, H) f32
        "wc1": jnp.stack(wc1).astype(jnp.bfloat16),       # (L, K, H, F)
        "bc1": jnp.stack(bc1),                            # (L, 1, F) f32
        "wc2": jnp.stack(wc2).astype(jnp.bfloat16),       # (L, K, F, H)
        "proj_w": rnd((H, 2 * out_channels), 0.1).astype(jnp.bfloat16),
        "proj_b": rnd((1, 2 * out_channels), 0.01),
    }


if __name__ == "__main__":
    n_vocab = 50
    out_channels = 4
    hidden_channels = 32
    filter_channels = 64
    n_heads = 2
    n_layers = 2
    kernel_size = 3
    B, T = 2, 8

    key = jax.random.PRNGKey(0)
    k_ids, k_params = jax.random.split(key)

    params = init_params(k_params, n_vocab=n_vocab, hidden=hidden_channels,
                         filter_channels=filter_channels, out_channels=out_channels,
                         n_heads=n_heads, n_layers=n_layers, kernel_size=kernel_size)

    ids = jax.random.randint(k_ids, (B, T), 0, n_vocab, dtype=jnp.int32)
    x_lengths = jnp.array([8, 5], dtype=jnp.int32)

    x, m, logs, x_mask = text_encoder_forward(
        ids, x_lengths, params, n_heads=n_heads, kernel_size=kernel_size)
    jax.block_until_ready((x, m, logs, x_mask))

    assert x.shape == (B, hidden_channels, T)
    assert m.shape == (B, out_channels, T)
    assert logs.shape == (B, out_channels, T)
    assert x_mask.shape == (B, 1, T)
    print("KERNEL_OK")
</pallas_src>

<mosaic_0001>
module attributes {stable_mosaic.version = 11 : i64} {
  func.func @text_encoder_kernel(%arg0: i32, %arg1: i32, %arg2: memref<2x8x32xf32, #tpu.memory_space<vmem>>, %arg3: memref<2x8x1xf32, #tpu.memory_space<vmem>>, %arg4: memref<2x1x8xf32, #tpu.memory_space<vmem>>, %arg5: memref<1x32x96xbf16, #tpu.memory_space<vmem>>, %arg6: memref<1x1x96xf32, #tpu.memory_space<vmem>>, %arg7: memref<1x32x32xbf16, #tpu.memory_space<vmem>>, %arg8: memref<1x6x32xf32, #tpu.memory_space<vmem>>, %arg9: memref<1x3x32x64xbf16, #tpu.memory_space<vmem>>, %arg10: memref<1x1x64xf32, #tpu.memory_space<vmem>>, %arg11: memref<1x3x64x32xbf16, #tpu.memory_space<vmem>>, %arg12: memref<32x8xbf16, #tpu.memory_space<vmem>>, %arg13: memref<1x8xf32, #tpu.memory_space<vmem>>, %arg14: memref<2x8x32xf32, #tpu.memory_space<vmem>>, %arg15: memref<2x8x8xf32, #tpu.memory_space<vmem>>, %arg16: memref<2x10x32xbf16, #tpu.memory_space<vmem>>, %arg17: memref<2x10x64xbf16, #tpu.memory_space<vmem>>) attributes {dimension_semantics = [#tpu.dimension_semantics<parallel>, #tpu.dimension_semantics<arbitrary>], iteration_bounds = array<i64: 1, 2>, scalar_prefetch = 0 : i64, scratch_operands = 2 : i64, tpu.core_type = #tpu.core_type<tc>, window_params = [{transform_indices = @transform_0, window_bounds = array<i64: 2, 8, 32>}, {transform_indices = @transform_1, window_bounds = array<i64: 2, 8, 1>}, {transform_indices = @transform_2, window_bounds = array<i64: 2, 1, 8>}, {transform_indices = @transform_3, window_bounds = array<i64: 1, 32, 96>}, {transform_indices = @transform_4, window_bounds = array<i64: 1, 1, 96>}, {transform_indices = @transform_5, window_bounds = array<i64: 1, 32, 32>}, {transform_indices = @transform_6, window_bounds = array<i64: 1, 6, 32>}, {transform_indices = @transform_7, window_bounds = array<i64: 1, 3, 32, 64>}, {transform_indices = @transform_8, window_bounds = array<i64: 1, 1, 64>}, {transform_indices = @transform_9, window_bounds = array<i64: 1, 3, 64, 32>}, {pipeline_mode = #tpu.pipeline_mode<synchronous>, transform_indices = @transform_10, window_bounds = array<i64: 32, 8>}, {pipeline_mode = #tpu.pipeline_mode<synchronous>, transform_indices = @transform_11, window_bounds = array<i64: 1, 8>}, {transform_indices = @transform_12, window_bounds = array<i64: 2, 8, 32>}, {transform_indices = @transform_13, window_bounds = array<i64: 2, 8, 8>}]} {
    %c0_i32 = arith.constant 0 : i32
    %0 = arith.cmpi eq, %arg1, %c0_i32 : i32
    %1 = arith.extui %0 : i1 to i32
    %c0_i32_0 = arith.constant 0 : i32
    %2 = arith.cmpi ne, %1, %c0_i32_0 : i32
    scf.if %2 {
      %c0_105 = arith.constant 0 : index
      %c0_106 = arith.constant 0 : index
      %c0_107 = arith.constant 0 : index
      %183 = vector.load %arg2[%c0_105, %c0_106, %c0_107] : memref<2x8x32xf32, #tpu.memory_space<vmem>>, vector<2x8x32xf32>
      %c0_108 = arith.constant 0 : index
      %c0_109 = arith.constant 0 : index
      %c0_110 = arith.constant 0 : index
      %184 = vector.load %arg14[%c0_108, %c0_109, %c0_110] : memref<2x8x32xf32, #tpu.memory_space<vmem>>, vector<2x8x32xf32>
      tpu.vector_store %arg14[%c0_108, %c0_109, %c0_110], %183 {strides = array<i32>} : memref<2x8x32xf32, #tpu.memory_space<vmem>>, vector<2x8x32xf32>,
    } else {
    }
    %c0 = arith.constant 0 : index
    %c0_1 = arith.constant 0 : index
    %c0_2 = arith.constant 0 : index
    %3 = vector.load %arg14[%c0, %c0_1, %c0_2] : memref<2x8x32xf32, #tpu.memory_space<vmem>>, vector<2x8x32xf32>
    %4 = vector.shape_cast %3 : vector<2x8x32xf32> to vector<16x32xf32>
    %c0_3 = arith.constant 0 : index
    %c0_4 = arith.constant 0 : index
    %c0_5 = arith.constant 0 : index
    %5 = vector.load %arg3[%c0_3, %c0_4, %c0_5] : memref<2x8x1xf32, #tpu.memory_space<vmem>>, vector<2x8x1xf32>
    %c0_6 = arith.constant 0 : index
    %c0_7 = arith.constant 0 : index
    %c0_8 = arith.constant 0 : index
    %6 = vector.load %arg4[%c0_6, %c0_7, %c0_8] : memref<2x1x8xf32, #tpu.memory_space<vmem>>, vector<2x1x8xf32>
    %7 = vector.shape_cast %5 : vector<2x8x1xf32> to vector<16x1xf32>
    %c0_9 = arith.constant 0 : index
    %c0_10 = arith.constant 0 : index
    %c0_11 = arith.constant 0 : index
    %8 = vector.load %arg8[%c0_9, %c0_10, %c0_11] : memref<1x6x32xf32, #tpu.memory_space<vmem>>, vector<1x6x32xf32>
    %9 = vector.shape_cast %8 : vector<1x6x32xf32> to vector<6x32xf32>
    %10 = vector.extract_strided_slice %9 {offsets = [0, 0], sizes = [1, 32], strides = [1, 1]} : vector<6x32xf32> to vector<1x32xf32>
    %11 = vector.extract_strided_slice %9 {offsets = [1, 0], sizes = [1, 32], strides = [1, 1]} : vector<6x32xf32> to vector<1x32xf32>
    %12 = vector.extract_strided_slice %9 {offsets = [2, 0], sizes = [1, 32], strides = [1, 1]} : vector<6x32xf32> to vector<1x32xf32>
    %13 = vector.extract_strided_slice %9 {offsets = [3, 0], sizes = [1, 32], strides = [1, 1]} : vector<6x32xf32> to vector<1x32xf32>
    %14 = vector.extract_strided_slice %9 {offsets = [4, 0], sizes = [1, 32], strides = [1, 1]} : vector<6x32xf32> to vector<1x32xf32>
    %15 = vector.extract_strided_slice %9 {offsets = [5, 0], sizes = [1, 32], strides = [1, 1]} : vector<6x32xf32> to vector<1x32xf32>
    %16 = arith.truncf %4 : vector<16x32xf32> to vector<16x32xbf16>
    %c0_12 = arith.constant 0 : index
    %c0_13 = arith.constant 0 : index
    %c0_14 = arith.constant 0 : index
    %17 = vector.load %arg5[%c0_12, %c0_13, %c0_14] : memref<1x32x96xbf16, #tpu.memory_space<vmem>>, vector<1x32x96xbf16>
    %18 = vector.shape_cast %17 : vector<1x32x96xbf16> to vector<32x96xbf16>
    %cst = arith.constant dense<0.000000e+00> : vector<16x96xf32>
    %19 = tpu.matmul %16, %18, %cst {dimension_numbers = #tpu.dot_dimension_numbers<[1], [0], [0], [1], [0, 0, 1, 1], [], []>} : vector<16x32xbf16>, vector<32x96xbf16>, vector<16x96xf32> -> vector<16x96xf32>
    %c0_15 = arith.constant 0 : index
    %c0_16 = arith.constant 0 : index
    %c0_17 = arith.constant 0 : index
    %20 = vector.load %arg6[%c0_15, %c0_16, %c0_17] : memref<1x1x96xf32, #tpu.memory_space<vmem>>, vector<1x1x96xf32>
    %21 = vector.shape_cast %20 : vector<1x1x96xf32> to vector<1x96xf32>
    %22 = vector.broadcast %21 : vector<1x96xf32> to vector<16x96xf32>
    %23 = arith.addf %19, %22 : vector<16x96xf32>
    %24 = arith.truncf %23 : vector<16x96xf32> to vector<16x96xbf16>
    %25 = vector.shape_cast %24 : vector<16x96xbf16> to vector<2x8x96xbf16>
    %26 = vector.broadcast %5 : vector<2x8x1xf32> to vector<2x8x8xf32>
    %27 = vector.broadcast %6 : vector<2x1x8xf32> to vector<2x8x8xf32>
    %28 = arith.mulf %26, %27 : vector<2x8x8xf32>
    %cst_18 = arith.constant 0.000000e+00 : f32
    %29 = vector.broadcast %cst_18 : f32 to vector<2x8x8xf32>
    %30 = arith.cmpf ogt, %28, %29 : vector<2x8x8xf32>
    %31 = vector.extract_strided_slice %25 {offsets = [0, 0, 0], sizes = [2, 8, 16], strides = [1, 1, 1]} : vector<2x8x96xbf16> to vector<2x8x16xbf16>
    %32 = vector.extract_strided_slice %25 {offsets = [0, 0, 32], sizes = [2, 8, 16], strides = [1, 1, 1]} : vector<2x8x96xbf16> to vector<2x8x16xbf16>
    %33 = vector.extract_strided_slice %25 {offsets = [0, 0, 64], sizes = [2, 8, 16], strides = [1, 1, 1]} : vector<2x8x96xbf16> to vector<2x8x16xbf16>
    "tpu.trace_start"() <{level = 10 : i32, message = "bqd,bkd->bqk"}> : () -> ()
    %cst_19 = arith.constant dense<0.000000e+00> : vector<2x8x8xf32>
    %34 = tpu.matmul %31, %32, %cst_19 {dimension_numbers = #tpu.dot_dimension_numbers<[2], [2], [1], [1], [0, 0, 0, 1, 1, 1], [0], [0]>} : vector<2x8x16xbf16>, vector<2x8x16xbf16>, vector<2x8x8xf32> -> vector<2x8x8xf32>
    %cst_20 = arith.constant -1.000000e+04 : f32
    "tpu.trace_stop"() : () -> ()
    %35 = vector.broadcast %cst_20 : f32 to vector<2x8x8xf32>
    %36 = arith.select %30, %34, %35 : vector<2x8x8xi1>, vector<2x8x8xf32>
    %cst_21 = arith.constant dense<0xFF800000> : vector<2x8xf32>
    %37 = vector.multi_reduction <maximumf>, %36, %cst_21 [2] : vector<2x8x8xf32> to vector<2x8xf32>
    %38 = vector.shape_cast %37 : vector<2x8xf32> to vector<2x8x1xf32>
    %39 = vector.broadcast %38 : vector<2x8x1xf32> to vector<2x8x8xf32>
    %40 = arith.subf %36, %39 : vector<2x8x8xf32>
    %41 = math.exp %40 : vector<2x8x8xf32>
    %cst_22 = arith.constant dense<0.000000e+00> : vector<2x8xf32>
    %42 = vector.multi_reduction <add>, %41, %cst_22 [2] : vector<2x8x8xf32> to vector<2x8xf32>
    %43 = vector.shape_cast %42 : vector<2x8xf32> to vector<2x8x1xf32>
    %44 = tpu.reciprocal %43 {approx = true} : vector<2x8x1xf32> -> vector<2x8x1xf32>
    %45 = arith.truncf %41 : vector<2x8x8xf32> to vector<2x8x8xbf16>
    "tpu.trace_start"() <{level = 10 : i32, message = "bqk,bkd->bqd"}> : () -> ()
    %cst_23 = arith.constant dense<0.000000e+00> : vector<2x8x16xf32>
    %46 = tpu.matmul %45, %33, %cst_23 {dimension_numbers = #tpu.dot_dimension_numbers<[2], [1], [1], [2], [0, 0, 0, 1, 1, 2], [0], [0]>} : vector<2x8x8xbf16>, vector<2x8x16xbf16>, vector<2x8x16xf32> -> vector<2x8x16xf32>
    "tpu.trace_stop"() : () -> ()
    %47 = vector.broadcast %44 : vector<2x8x1xf32> to vector<2x8x16xf32>
    %48 = arith.mulf %46, %47 : vector<2x8x16xf32>
    %49 = vector.extract_strided_slice %25 {offsets = [0, 0, 16], sizes = [2, 8, 16], strides = [1, 1, 1]} : vector<2x8x96xbf16> to vector<2x8x16xbf16>
    %50 = vector.extract_strided_slice %25 {offsets = [0, 0, 48], sizes = [2, 8, 16], strides = [1, 1, 1]} : vector<2x8x96xbf16> to vector<2x8x16xbf16>
    %51 = vector.extract_strided_slice %25 {offsets = [0, 0, 80], sizes = [2, 8, 16], strides = [1, 1, 1]} : vector<2x8x96xbf16> to vector<2x8x16xbf16>
    "tpu.trace_start"() <{level = 10 : i32, message = "bqd,bkd->bqk"}> : () -> ()
    %cst_24 = arith.constant dense<0.000000e+00> : vector<2x8x8xf32>
    %52 = tpu.matmul %49, %50, %cst_24 {dimension_numbers = #tpu.dot_dimension_numbers<[2], [2], [1], [1], [0, 0, 0, 1, 1, 1], [0], [0]>} : vector<2x8x16xbf16>, vector<2x8x16xbf16>, vector<2x8x8xf32> -> vector<2x8x8xf32>
    %cst_25 = arith.constant -1.000000e+04 : f32
    "tpu.trace_stop"() : () -> ()
    %53 = vector.broadcast %cst_25 : f32 to vector<2x8x8xf32>
    %54 = arith.select %30, %52, %53 : vector<2x8x8xi1>, vector<2x8x8xf32>
    %cst_26 = arith.constant dense<0xFF800000> : vector<2x8xf32>
    %55 = vector.multi_reduction <maximumf>, %54, %cst_26 [2] : vector<2x8x8xf32> to vector<2x8xf32>
    %56 = vector.shape_cast %55 : vector<2x8xf32> to vector<2x8x1xf32>
    %57 = vector.broadcast %56 : vector<2x8x1xf32> to vector<2x8x8xf32>
    %58 = arith.subf %54, %57 : vector<2x8x8xf32>
    %59 = math.exp %58 : vector<2x8x8xf32>
    %cst_27 = arith.constant dense<0.000000e+00> : vector<2x8xf32>
    %60 = vector.multi_reduction <add>, %59, %cst_27 [2] : vector<2x8x8xf32> to vector<2x8xf32>
    %61 = vector.shape_cast %60 : vector<2x8xf32> to vector<2x8x1xf32>
    %62 = tpu.reciprocal %61 {approx = true} : vector<2x8x1xf32> -> vector<2x8x1xf32>
    %63 = arith.truncf %59 : vector<2x8x8xf32> to vector<2x8x8xbf16>
    "tpu.trace_start"() <{level = 10 : i32, message = "bqk,bkd->bqd"}> : () -> ()
    %cst_28 = arith.constant dense<0.000000e+00> : vector<2x8x16xf32>
    %64 = tpu.matmul %63, %51, %cst_28 {dimension_numbers = #tpu.dot_dimension_numbers<[2], [1], [1], [2], [0, 0, 0, 1, 1, 2], [0], [0]>} : vector<2x8x8xbf16>, vector<2x8x16xbf16>, vector<2x8x16xf32> -> vector<2x8x16xf32>
    "tpu.trace_stop"() : () -> ()
    %65 = vector.broadcast %62 : vector<2x8x1xf32> to vector<2x8x16xf32>
    %66 = arith.mulf %64, %65 : vector<2x8x16xf32>
    %67 = tpu.concatenate %48, %66 in 2 : vector<2x8x16xf32>, vector<2x8x16xf32> -> vector<2x8x32xf32>
    %68 = vector.shape_cast %67 : vector<2x8x32xf32> to vector<16x32xf32>
    %69 = arith.truncf %68 : vector<16x32xf32> to vector<16x32xbf16>
    %c0_29 = arith.constant 0 : index
    %c0_30 = arith.constant 0 : index
    %c0_31 = arith.constant 0 : index
    %70 = vector.load %arg7[%c0_29, %c0_30, %c0_31] : memref<1x32x32xbf16, #tpu.memory_space<vmem>>, vector<1x32x32xbf16>
    %71 = vector.shape_cast %70 : vector<1x32x32xbf16> to vector<32x32xbf16>
    %cst_32 = arith.constant dense<0.000000e+00> : vector<16x32xf32>
    %72 = tpu.matmul %69, %71, %cst_32 {dimension_numbers = #tpu.dot_dimension_numbers<[1], [0], [0], [1], [0, 0, 1, 1], [], []>} : vector<16x32xbf16>, vector<32x32xbf16>, vector<16x32xf32> -> vector<16x32xf32>
    %73 = vector.broadcast %10 : vector<1x32xf32> to vector<16x32xf32>
    %74 = arith.addf %72, %73 : vector<16x32xf32>
    %75 = arith.addf %4, %74 : vector<16x32xf32>
    %cst_33 = arith.constant dense<0.000000e+00> : vector<16xf32>
    %76 = vector.multi_reduction <add>, %75, %cst_33 [1] : vector<16x32xf32> to vector<16xf32>
    %77 = vector.shape_cast %76 : vector<16xf32> to vector<16x1xf32>
    %cst_34 = arith.constant 3.200000e+01 : f32
    %78 = vector.broadcast %cst_34 : f32 to vector<16x1xf32>
    %79 = arith.divf %77, %78 : vector<16x1xf32>
    %80 = vector.broadcast %79 : vector<16x1xf32> to vector<16x32xf32>
    %81 = arith.subf %75, %80 : vector<16x32xf32>
    %82 = arith.mulf %81, %81 : vector<16x32xf32>
    %cst_35 = arith.constant dense<0.000000e+00> : vector<16xf32>
    %83 = vector.multi_reduction <add>, %82, %cst_35 [1] : vector<16x32xf32> to vector<16xf32>
    %84 = vector.shape_cast %83 : vector<16xf32> to vector<16x1xf32>
    %cst_36 = arith.constant 3.200000e+01 : f32
    %85 = vector.broadcast %cst_36 : f32 to vector<16x1xf32>
    %86 = arith.divf %84, %85 : vector<16x1xf32>
    %87 = vector.broadcast %79 : vector<16x1xf32> to vector<16x32xf32>
    %88 = arith.subf %75, %87 : vector<16x32xf32>
    %cst_37 = arith.constant 9.99999974E-6 : f32
    %89 = vector.broadcast %cst_37 : f32 to vector<16x1xf32>
    %90 = arith.addf %86, %89 : vector<16x1xf32>
    %91 = math.rsqrt %90 : vector<16x1xf32>
    %92 = vector.broadcast %91 : vector<16x1xf32> to vector<16x32xf32>
    %93 = arith.mulf %88, %92 : vector<16x32xf32>
    %94 = vector.broadcast %11 : vector<1x32xf32> to vector<16x32xf32>
    %95 = arith.mulf %93, %94 : vector<16x32xf32>
    %96 = vector.broadcast %12 : vector<1x32xf32> to vector<16x32xf32>
    %97 = arith.addf %95, %96 : vector<16x32xf32>
    %c0_i32_38 = arith.constant 0 : i32
    %98 = arith.cmpi eq, %arg1, %c0_i32_38 : i32
    %99 = arith.extui %98 : i1 to i32
    %c0_i32_39 = arith.constant 0 : i32
    %100 = arith.cmpi ne, %99, %c0_i32_39 : i32
    scf.if %100 {
      %cst_105 = arith.constant 0.000000e+00 : bf16
      %183 = vector.broadcast %cst_105 : bf16 to vector<2x1x32xbf16>
      %c0_106 = arith.constant 0 : index
      %c0_107 = arith.constant 0 : index
      %c0_108 = arith.constant 0 : index
      %184 = vector.load %arg16[%c0_106, %c0_107, %c0_108] : memref<2x10x32xbf16, #tpu.memory_space<vmem>>, vector<2x1x32xbf16>
      tpu.vector_store %arg16[%c0_106, %c0_107, %c0_108], %183 {strides = array<i32>} : memref<2x10x32xbf16, #tpu.memory_space<vmem>>, vector<2x1x32xbf16>,
      %cst_109 = arith.constant 0.000000e+00 : bf16
      %185 = vector.broadcast %cst_109 : bf16 to vector<2x1x64xbf16>
      %c0_110 = arith.constant 0 : index
      %c0_111 = arith.constant 0 : index
      %c0_112 = arith.constant 0 : index
      %186 = vector.load %arg17[%c0_110, %c0_111, %c0_112] : memref<2x10x64xbf16, #tpu.memory_space<vmem>>, vector<2x1x64xbf16>
      tpu.vector_store %arg17[%c0_110, %c0_111, %c0_112], %185 {strides = array<i32>} : memref<2x10x64xbf16, #tpu.memory_space<vmem>>, vector<2x1x64xbf16>,
      %cst_113 = arith.constant 0.000000e+00 : bf16
      %187 = vector.broadcast %cst_113 : bf16 to vector<2x1x32xbf16>
      %c0_114 = arith.constant 0 : index
      %c9 = arith.constant 9 : index
      %c0_115 = arith.constant 0 : index
      %188 = vector.load %arg16[%c0_114, %c9, %c0_115] : memref<2x10x32xbf16, #tpu.memory_space<vmem>>, vector<2x1x32xbf16>
      tpu.vector_store %arg16[%c0_114, %c9, %c0_115], %187 {strides = array<i32>} : memref<2x10x32xbf16, #tpu.memory_space<vmem>>, vector<2x1x32xbf16>,
      %cst_116 = arith.constant 0.000000e+00 : bf16
      %189 = vector.broadcast %cst_116 : bf16 to vector<2x1x64xbf16>
      %c0_117 = arith.constant 0 : index
      %c9_118 = arith.constant 9 : index
      %c0_119 = arith.constant 0 : index
      %190 = vector.load %arg17[%c0_117, %c9_118, %c0_119] : memref<2x10x64xbf16, #tpu.memory_space<vmem>>, vector<2x1x64xbf16>
      tpu.vector_store %arg17[%c0_117, %c9_118, %c0_119], %189 {strides = array<i32>} : memref<2x10x64xbf16, #tpu.memory_space<vmem>>, vector<2x1x64xbf16>,
    } else {
    }
    %101 = vector.broadcast %7 : vector<16x1xf32> to vector<16x32xf32>
    %102 = arith.mulf %97, %101 : vector<16x32xf32>
    %103 = vector.shape_cast %102 : vector<16x32xf32> to vector<2x8x32xf32>
    %104 = arith.truncf %103 : vector<2x8x32xf32> to vector<2x8x32xbf16>
    %c0_40 = arith.constant 0 : index
    %c1 = arith.constant 1 : index
    %c0_41 = arith.constant 0 : index
    %105 = vector.load %arg16[%c0_40, %c1, %c0_41] : memref<2x10x32xbf16, #tpu.memory_space<vmem>>, vector<2x8x32xbf16>
    tpu.vector_store %arg16[%c0_40, %c1, %c0_41], %104 {strides = array<i32>} : memref<2x10x32xbf16, #tpu.memory_space<vmem>>, vector<2x8x32xbf16>,
    %c0_42 = arith.constant 0 : index
    %c0_43 = arith.constant 0 : index
    %c0_44 = arith.constant 0 : index
    %106 = vector.load %arg16[%c0_42, %c0_43, %c0_44] : memref<2x10x32xbf16, #tpu.memory_space<vmem>>, vector<2x8x32xbf16>
    %107 = vector.shape_cast %106 : vector<2x8x32xbf16> to vector<16x32xbf16>
    %c0_45 = arith.constant 0 : index
    %c0_46 = arith.constant 0 : index
    %c0_47 = arith.constant 0 : index
    %c0_48 = arith.constant 0 : index
    %108 = vector.load %arg9[%c0_45, %c0_46, %c0_47, %c0_48] : memref<1x3x32x64xbf16, #tpu.memory_space<vmem>>, vector<1x1x32x64xbf16>
    %109 = vector.shape_cast %108 : vector<1x1x32x64xbf16> to vector<32x64xbf16>
    %cst_49 = arith.constant dense<0.000000e+00> : vector<16x64xf32>
    %110 = tpu.matmul %107, %109, %cst_49 {dimension_numbers = #tpu.dot_dimension_numbers<[1], [0], [0], [1], [0, 0, 1, 1], [], []>} : vector<16x32xbf16>, vector<32x64xbf16>, vector<16x64xf32> -> vector<16x64xf32>
    %c0_50 = arith.constant 0 : index
    %c1_51 = arith.constant 1 : index
    %c0_52 = arith.constant 0 : index
    %111 = vector.load %arg16[%c0_50, %c1_51, %c0_52] : memref<2x10x32xbf16, #tpu.memory_space<vmem>>, vector<2x8x32xbf16>
    %112 = vector.shape_cast %111 : vector<2x8x32xbf16> to vector<16x32xbf16>
    %c0_53 = arith.constant 0 : index
    %c1_54 = arith.constant 1 : index
    %c0_55 = arith.constant 0 : index
    %c0_56 = arith.constant 0 : index
    %113 = vector.load %arg9[%c0_53, %c1_54, %c0_55, %c0_56] : memref<1x3x32x64xbf16, #tpu.memory_space<vmem>>, vector<1x1x32x64xbf16>
    %114 = vector.shape_cast %113 : vector<1x1x32x64xbf16> to vector<32x64xbf16>
    %cst_57 = arith.constant dense<0.000000e+00> : vector<16x64xf32>
    %115 = tpu.matmul %112, %114, %cst_57 {dimension_numbers = #tpu.dot_dimension_numbers<[1], [0], [0], [1], [0, 0, 1, 1], [], []>} : vector<16x32xbf16>, vector<32x64xbf16>, vector<16x64xf32> -> vector<16x64xf32>
    %116 = arith.addf %110, %115 : vector<16x64xf32>
    %c0_58 = arith.constant 0 : index
    %c2 = arith.constant 2 : index
    %c0_59 = arith.constant 0 : index
    %117 = vector.load %arg16[%c0_58, %c2, %c0_59] : memref<2x10x32xbf16, #tpu.memory_space<vmem>>, vector<2x8x32xbf16>
    %118 = vector.shape_cast %117 : vector<2x8x32xbf16> to vector<16x32xbf16>
    %c0_60 = arith.constant 0 : index
    %c2_61 = arith.constant 2 : index
    %c0_62 = arith.constant 0 : index
    %c0_63 = arith.constant 0 : index
    %119 = vector.load %arg9[%c0_60, %c2_61, %c0_62, %c0_63] : memref<1x3x32x64xbf16, #tpu.memory_space<vmem>>, vector<1x1x32x64xbf16>
    %120 = vector.shape_cast %119 : vector<1x1x32x64xbf16> to vector<32x64xbf16>
    %cst_64 = arith.constant dense<0.000000e+00> : vector<16x64xf32>
    %121 = tpu.matmul %118, %120, %cst_64 {dimension_numbers = #tpu.dot_dimension_numbers<[1], [0], [0], [1], [0, 0, 1, 1], [], []>} : vector<16x32xbf16>, vector<32x64xbf16>, vector<16x64xf32> -> vector<16x64xf32>
    %122 = arith.addf %116, %121 : vector<16x64xf32>
    %c0_65 = arith.constant 0 : index
    %c0_66 = arith.constant 0 : index
    %c0_67 = arith.constant 0 : index
    %123 = vector.load %arg10[%c0_65, %c0_66, %c0_67] : memref<1x1x64xf32, #tpu.memory_space<vmem>>, vector<1x1x64xf32>
    %124 = vector.shape_cast %123 : vector<1x1x64xf32> to vector<1x64xf32>
    %125 = vector.broadcast %124 : vector<1x64xf32> to vector<16x64xf32>
    %126 = arith.addf %122, %125 : vector<16x64xf32>
    %cst_68 = arith.constant 0.000000e+00 : f32
    %127 = vector.broadcast %cst_68 : f32 to vector<16x64xf32>
    %128 = arith.maximumf %126, %127 : vector<16x64xf32>
    %129 = vector.broadcast %7 : vector<16x1xf32> to vector<16x64xf32>
    %130 = arith.mulf %128, %129 : vector<16x64xf32>
    %131 = vector.shape_cast %130 : vector<16x64xf32> to vector<2x8x64xf32>
    %132 = arith.truncf %131 : vector<2x8x64xf32> to vector<2x8x64xbf16>
    %c0_69 = arith.constant 0 : index
    %c1_70 = arith.constant 1 : index
    %c0_71 = arith.constant 0 : index
    %133 = vector.load %arg17[%c0_69, %c1_70, %c0_71] : memref<2x10x64xbf16, #tpu.memory_space<vmem>>, vector<2x8x64xbf16>
    tpu.vector_store %arg17[%c0_69, %c1_70, %c0_71], %132 {strides = array<i32>} : memref<2x10x64xbf16, #tpu.memory_space<vmem>>, vector<2x8x64xbf16>,
    %c0_72 = arith.constant 0 : index
    %c0_73 = arith.constant 0 : index
    %c0_74 = arith.constant 0 : index
    %134 = vector.load %arg17[%c0_72, %c0_73, %c0_74] : memref<2x10x64xbf16, #tpu.memory_space<vmem>>, vector<2x8x64xbf16>
    %135 = vector.shape_cast %134 : vector<2x8x64xbf16> to vector<16x64xbf16>
    %c0_75 = arith.constant 0 : index
    %c0_76 = arith.constant 0 : index
    %c0_77 = arith.constant 0 : index
    %c0_78 = arith.constant 0 : index
    %136 = vector.load %arg11[%c0_75, %c0_76, %c0_77, %c0_78] : memref<1x3x64x32xbf16, #tpu.memory_space<vmem>>, vector<1x1x64x32xbf16>
    %137 = vector.shape_cast %136 : vector<1x1x64x32xbf16> to vector<64x32xbf16>
    %cst_79 = arith.constant dense<0.000000e+00> : vector<16x32xf32>
    %138 = tpu.matmul %135, %137, %cst_79 {dimension_numbers = #tpu.dot_dimension_numbers<[1], [0], [0], [1], [0, 0, 1, 1], [], []>} : vector<16x64xbf16>, vector<64x32xbf16>, vector<16x32xf32> -> vector<16x32xf32>
    %c0_80 = arith.constant 0 : index
    %c1_81 = arith.constant 1 : index
    %c0_82 = arith.constant 0 : index
    %139 = vector.load %arg17[%c0_80, %c1_81, %c0_82] : memref<2x10x64xbf16, #tpu.memory_space<vmem>>, vector<2x8x64xbf16>
    %140 = vector.shape_cast %139 : vector<2x8x64xbf16> to vector<16x64xbf16>
    %c0_83 = arith.constant 0 : index
    %c1_84 = arith.constant 1 : index
    %c0_85 = arith.constant 0 : index
    %c0_86 = arith.constant 0 : index
    %141 = vector.load %arg11[%c0_83, %c1_84, %c0_85, %c0_86] : memref<1x3x64x32xbf16, #tpu.memory_space<vmem>>, vector<1x1x64x32xbf16>
    %142 = vector.shape_cast %141 : vector<1x1x64x32xbf16> to vector<64x32xbf16>
    %cst_87 = arith.constant dense<0.000000e+00> : vector<16x32xf32>
    %143 = tpu.matmul %140, %142, %cst_87 {dimension_numbers = #tpu.dot_dimension_numbers<[1], [0], [0], [1], [0, 0, 1, 1], [], []>} : vector<16x64xbf16>, vector<64x32xbf16>, vector<16x32xf32> -> vector<16x32xf32>
    %144 = arith.addf %138, %143 : vector<16x32xf32>
    %c0_88 = arith.constant 0 : index
    %c2_89 = arith.constant 2 : index
    %c0_90 = arith.constant 0 : index
    %145 = vector.load %arg17[%c0_88, %c2_89, %c0_90] : memref<2x10x64xbf16, #tpu.memory_space<vmem>>, vector<2x8x64xbf16>
    %146 = vector.shape_cast %145 : vector<2x8x64xbf16> to vector<16x64xbf16>
    %c0_91 = arith.constant 0 : index
    %c2_92 = arith.constant 2 : index
    %c0_93 = arith.constant 0 : index
    %c0_94 = arith.constant 0 : index
    %147 = vector.load %arg11[%c0_91, %c2_92, %c0_93, %c0_94] : memref<1x3x64x32xbf16, #tpu.memory_space<vmem>>, vector<1x1x64x32xbf16>
    %148 = vector.shape_cast %147 : vector<1x1x64x32xbf16> to vector<64x32xbf16>
    %cst_95 = arith.constant dense<0.000000e+00> : vector<16x32xf32>
    %149 = tpu.matmul %146, %148, %cst_95 {dimension_numbers = #tpu.dot_dimension_numbers<[1], [0], [0], [1], [0, 0, 1, 1], [], []>} : vector<16x64xbf16>, vector<64x32xbf16>, vector<16x32xf32> -> vector<16x32xf32>
    %150 = arith.addf %144, %149 : vector<16x32xf32>
    %151 = vector.broadcast %13 : vector<1x32xf32> to vector<16x32xf32>
    %152 = arith.addf %150, %151 : vector<16x32xf32>
    %153 = vector.broadcast %7 : vector<16x1xf32> to vector<16x32xf32>
    %154 = arith.mulf %152, %153 : vector<16x32xf32>
    %155 = arith.addf %97, %154 : vector<16x32xf32>
    %cst_96 = arith.constant dense<0.000000e+00> : vector<16xf32>
    %156 = vector.multi_reduction <add>, %155, %cst_96 [1] : vector<16x32xf32> to vector<16xf32>
    %157 = vector.shape_cast %156 : vector<16xf32> to vector<16x1xf32>
    %cst_97 = arith.constant 3.200000e+01 : f32
    %158 = vector.broadcast %cst_97 : f32 to vector<16x1xf32>
    %159 = arith.divf %157, %158 : vector<16x1xf32>
    %160 = vector.broadcast %159 : vector<16x1xf32> to vector<16x32xf32>
    %161 = arith.subf %155, %160 : vector<16x32xf32>
    %162 = arith.mulf %161, %161 : vector<16x32xf32>
    %cst_98 = arith.constant dense<0.000000e+00> : vector<16xf32>
    %163 = vector.multi_reduction <add>, %162, %cst_98 [1] : vector<16x32xf32> to vector<16xf32>
    %164 = vector.shape_cast %163 : vector<16xf32> to vector<16x1xf32>
    %cst_99 = arith.constant 3.200000e+01 : f32
    %165 = vector.broadcast %cst_99 : f32 to vector<16x1xf32>
    %166 = arith.divf %164, %165 : vector<16x1xf32>
    %167 = vector.broadcast %159 : vector<16x1xf32> to vector<16x32xf32>
    %168 = arith.subf %155, %167 : vector<16x32xf32>
    %cst_100 = arith.constant 9.99999974E-6 : f32
    %169 = vector.broadcast %cst_100 : f32 to vector<16x1xf32>
    %170 = arith.addf %166, %169 : vector<16x1xf32>
    %171 = math.rsqrt %170 : vector<16x1xf32>
    %172 = vector.broadcast %171 : vector<16x1xf32> to vector<16x32xf32>
    %173 = arith.mulf %168, %172 : vector<16x32xf32>
    %174 = vector.broadcast %14 : vector<1x32xf32> to vector<16x32xf32>
    %175 = arith.mulf %173, %174 : vector<16x32xf32>
    %176 = vector.broadcast %15 : vector<1x32xf32> to vector<16x32xf32>
    %177 = arith.addf %175, %176 : vector<16x32xf32>
    %178 = vector.shape_cast %177 : vector<16x32xf32> to vector<2x8x32xf32>
    %c0_101 = arith.constant 0 : index
    %c0_102 = arith.constant 0 : index
    %c0_103 = arith.constant 0 : index
    %179 = vector.load %arg14[%c0_101, %c0_102, %c0_103] : memref<2x8x32xf32, #tpu.memory_space<vmem>>, vector<2x8x32xf32>
    tpu.vector_store %arg14[%c0_101, %c0_102, %c0_103], %178 {strides = array<i32>} : memref<2x8x32xf32, #tpu.memory_space<vmem>>, vector<2x8x32xf32>,
    %c1_i32 = arith.constant 1 : i32
    %180 = arith.cmpi eq, %arg1, %c1_i32 : i32
    %181 = arith.extui %180 : i1 to i32
    %c0_i32_104 = arith.constant 0 : i32
    %182 = arith.cmpi ne, %181, %c0_i32_104 : i32
    scf.if %182 {
      %183 = vector.broadcast %7 : vector<16x1xf32> to vector<16x32xf32>
      %184 = arith.mulf %177, %183 : vector<16x32xf32>
      %185 = vector.shape_cast %184 : vector<16x32xf32> to vector<2x8x32xf32>
      %c0_105 = arith.constant 0 : index
      %c0_106 = arith.constant 0 : index
      %c0_107 = arith.constant 0 : index
      %186 = vector.load %arg14[%c0_105, %c0_106, %c0_107] : memref<2x8x32xf32, #tpu.memory_space<vmem>>, vector<2x8x32xf32>
      tpu.vector_store %arg14[%c0_105, %c0_106, %c0_107], %185 {strides = array<i32>} : memref<2x8x32xf32, #tpu.memory_space<vmem>>, vector<2x8x32xf32>,
      %187 = arith.truncf %184 : vector<16x32xf32> to vector<16x32xbf16>
      %c0_108 = arith.constant 0 : index
      %c0_109 = arith.constant 0 : index
      %188 = vector.load %arg12[%c0_108, %c0_109] : memref<32x8xbf16, #tpu.memory_space<vmem>>, vector<32x8xbf16>
      %cst_110 = arith.constant dense<0.000000e+00> : vector<16x8xf32>
      %189 = tpu.matmul %187, %188, %cst_110 {dimension_numbers = #tpu.dot_dimension_numbers<[1], [0], [0], [1], [0, 0, 1, 1], [], []>} : vector<16x32xbf16>, vector<32x8xbf16>, vector<16x8xf32> -> vector<16x8xf32>
      %c0_111 = arith.constant 0 : index
      %c0_112 = arith.constant 0 : index
      %190 = vector.load %arg13[%c0_111, %c0_112] : memref<1x8xf32, #tpu.memory_space<vmem>>, vector<1x8xf32>
      %191 = vector.broadcast %190 : vector<1x8xf32> to vector<16x8xf32>
      %192 = arith.addf %189, %191 : vector<16x8xf32>
      %193 = vector.broadcast %7 : vector<16x1xf32> to vector<16x8xf32>
      %194 = arith.mulf %192, %193 : vector<16x8xf32>
      %195 = vector.shape_cast %194 : vector<16x8xf32> to vector<2x8x8xf32>
      %c0_113 = arith.constant 0 : index
      %c0_114 = arith.constant 0 : index
      %c0_115 = arith.constant 0 : index
      %196 = vector.load %arg15[%c0_113, %c0_114, %c0_115] : memref<2x8x8xf32, #tpu.memory_space<vmem>>, vector<2x8x8xf32>
      tpu.vector_store %arg15[%c0_113, %c0_114, %c0_115], %195 {strides = array<i32>} : memref<2x8x8xf32, #tpu.memory_space<vmem>>, vector<2x8x8xf32>,
    } else {
    }
    return
  }
  func.func @transform_0(%arg0: i32, %arg1: i32) -> (i32, i32, i32) {
    %c0_i32 = arith.constant 0 : i32
    %c0_i32_0 = arith.constant 0 : i32
    %c0_i32_1 = arith.constant 0 : i32
    return %arg0, %c0_i32, %c0_i32_0 : i32, i32, i32
  }
  func.func @transform_1(%arg0: i32, %arg1: i32) -> (i32, i32, i32) {
    %c0_i32 = arith.constant 0 : i32
    %c0_i32_0 = arith.constant 0 : i32
    %c0_i32_1 = arith.constant 0 : i32
    return %arg0, %c0_i32, %c0_i32_0 : i32, i32, i32
  }
  func.func @transform_2(%arg0: i32, %arg1: i32) -> (i32, i32, i32) {
    %c0_i32 = arith.constant 0 : i32
    %c0_i32_0 = arith.constant 0 : i32
    %c0_i32_1 = arith.constant 0 : i32
    return %arg0, %c0_i32, %c0_i32_0 : i32, i32, i32
  }
  func.func @transform_3(%arg0: i32, %arg1: i32) -> (i32, i32, i32) {
    %c0_i32 = arith.constant 0 : i32
    %c0_i32_0 = arith.constant 0 : i32
    %c0_i32_1 = arith.constant 0 : i32
    return %arg1, %c0_i32, %c0_i32_0 : i32, i32, i32
  }
  func.func @transform_4(%arg0: i32, %arg1: i32) -> (i32, i32, i32) {
    %c0_i32 = arith.constant 0 : i32
    %c0_i32_0 = arith.constant 0 : i32
    %c0_i32_1 = arith.constant 0 : i32
    return %arg1, %c0_i32, %c0_i32_0 : i32, i32, i32
  }
  func.func @transform_5(%arg0: i32, %arg1: i32) -> (i32, i32, i32) {
    %c0_i32 = arith.constant 0 : i32
    %c0_i32_0 = arith.constant 0 : i32
    %c0_i32_1 = arith.constant 0 : i32
    return %arg1, %c0_i32, %c0_i32_0 : i32, i32, i32
  }
  func.func @transform_6(%arg0: i32, %arg1: i32) -> (i32, i32, i32) {
    %c0_i32 = arith.constant 0 : i32
    %c0_i32_0 = arith.constant 0 : i32
    %c0_i32_1 = arith.constant 0 : i32
    return %arg1, %c0_i32, %c0_i32_0 : i32, i32, i32
  }
  func.func @transform_7(%arg0: i32, %arg1: i32) -> (i32, i32, i32, i32) {
    %c0_i32 = arith.constant 0 : i32
    %c0_i32_0 = arith.constant 0 : i32
    %c0_i32_1 = arith.constant 0 : i32
    %c0_i32_2 = arith.constant 0 : i32
    return %arg1, %c0_i32, %c0_i32_0, %c0_i32_1 : i32, i32, i32, i32
  }
  func.func @transform_8(%arg0: i32, %arg1: i32) -> (i32, i32, i32) {
    %c0_i32 = arith.constant 0 : i32
    %c0_i32_0 = arith.constant 0 : i32
    %c0_i32_1 = arith.constant 0 : i32
    return %arg1, %c0_i32, %c0_i32_0 : i32, i32, i32
  }
  func.func @transform_9(%arg0: i32, %arg1: i32) -> (i32, i32, i32, i32) {
    %c0_i32 = arith.constant 0 : i32
    %c0_i32_0 = arith.constant 0 : i32
    %c0_i32_1 = arith.constant 0 : i32
    %c0_i32_2 = arith.constant 0 : i32
    return %arg1, %c0_i32, %c0_i32_0, %c0_i32_1 : i32, i32, i32, i32
  }
  func.func @transform_10(%arg0: i32, %arg1: i32) -> (i32, i32) {
    %c0_i32 = arith.constant 0 : i32
    %c0_i32_0 = arith.constant 0 : i32
    %c0_i32_1 = arith.constant 0 : i32
    return %c0_i32, %c0_i32_0 : i32, i32
  }
  func.func @transform_11(%arg0: i32, %arg1: i32) -> (i32, i32) {
    %c0_i32 = arith.constant 0 : i32
    %c0_i32_0 = arith.constant 0 : i32
    %c0_i32_1 = arith.constant 0 : i32
    return %c0_i32, %c0_i32_0 : i32, i32
  }
  func.func @transform_12(%arg0: i32, %arg1: i32) -> (i32, i32, i32) {
    %c0_i32 = arith.constant 0 : i32
    %c0_i32_0 = arith.constant 0 : i32
    %c0_i32_1 = arith.constant 0 : i32
    return %arg0, %c0_i32, %c0_i32_0 : i32, i32, i32
  }
  func.func @transform_13(%arg0: i32, %arg1: i32) -> (i32, i32, i32) {
    %c0_i32 = arith.constant 0 : i32
    %c0_i32_0 = arith.constant 0 : i32
    %c0_i32_1 = arith.constant 0 : i32
    return %arg0, %c0_i32, %c0_i32_0 : i32, i32, i32
  }
}

</mosaic_0001>

<bundles_post_ra>
// kernel: tpu_custom_call.1
= control target key start
LH: loop header
LB: loop body
LE: loop exit
PB: predicated region body
PF: predicated region fallthrough
CT: control target
= control target key end

     0   :  { %s3318_s0 = inlined_call_operand.vmem [shape: f32[2,8,32], index: 0, kind: input, shape index: {}]   ;;  %s3319_s1 = inlined_call_operand.vmem [shape: f32[2,8,1], index: 1, kind: input, shape index: {}]   ;;  %s3320_s2 = inlined_call_operand.vmem [shape: f32[2,1,8], index: 2, kind: input, shape index: {}]   ;;  %s3321_s3 = inlined_call_operand.vmem [shape: bf16[2,32,96], index: 3, kind: input, shape index: {}]   ;;  %s3322_s4 = inlined_call_operand.vmem [shape: f32[2,1,96], index: 4, kind: input, shape index: {}]   ;;  %s3323_s5 = inlined_call_operand.vmem [shape: bf16[2,32,32], index: 5, kind: input, shape index: {}]   ;;  %s3324_s6 = inlined_call_operand.vmem [shape: f32[2,6,32], index: 6, kind: input, shape index: {}]   ;;  %s3325_s7 = inlined_call_operand.vmem [shape: bf16[2,3,32,64], index: 7, kind: input, shape index: {}]   ;;  %s3326_s8 = inlined_call_operand.vmem [shape: f32[2,1,64], index: 8, kind: input, shape index: {}]   ;;  %s3327_s9 = inlined_call_operand.vmem [shape: bf16[2,3,64,32], index: 9, kind: input, shape index: {}]   ;;  %s3328_s10 = inlined_call_operand.vmem [shape: bf16[32,8], index: 10, kind: input, shape index: {}]   ;;  %s3329_s11 = inlined_call_operand.vmem [shape: f32[1,8], index: 11, kind: input, shape index: {}]   ;;  %s3330_s12 = inlined_call_operand.hbm [shape: f32[2,8,32], index: 12, kind: output, shape index: {0}]   ;;  %s3331_s13 = inlined_call_operand.hbm [shape: f32[2,8,8], index: 13, kind: output, shape index: {1}]  }
   0x1   :  { %3336 = sst [smem:[#allocation13_spill]] %s3330_s12 }
   0x2   :  { %3337 = sst [smem:[#allocation14_spill]] %s3331_s13 }
   0x3   :  { %19 = vsyncpa [#allocation5], 0 }
   0x4   :  { %20 = vsyncpa [#allocation7], 0  ;;  %s2878_s25 = smov 0   ;;  %s2880_s26 = smov 0  }
   0x5   :  { %s2882_s27 = smov 0  }
   0x6 LB: > { %3338 = sst [smem:[#allocation10_spill]] %s2787_s26  ;;  %s35_s29 = sadd.s32 1, %s2787_s26  ;;  %s2791_s27 = sphi %s2882_s27, %s26_s27   ;;  %s2787_s26 = sphi %s2880_s26, %s3357_s26   ;;  %s2783_s25 = sphi %s2878_s25, %s3356_s25  }
   0x7   : > { %3339 = sst [smem:[#allocation11_spill]] %s2791_s27  ;;  %p36_p0 = scmp.ge.s32.totalorder %s35_s29, 2 }
   0x8   : > { %p2307_p1 = scmp.ge.s32.totalorder %s2791_s27, 1  ;;  %p491_p2 = scmp.lt.s32.totalorder %s2791_s27, 3 }
   0x9   : > { %s3359_s29 = smov (%p36_p0, %s35_s29), 0 }
   0xa   : > { %3340 = sst [smem:[#allocation12_spill]] %s3359_s29  ;;  %p492_p3 = pnand %p2307_p1, %p491_p2 }
   0xb   : > { %p586_p4 = scmp.lt.s32.totalorder (!%p492_p3), %s2783_s25, 1  ;;  %p2315_p5 = scmp.ne.s32.totalorder (!%p492_p3), %s2783_s25, 0 }
   0xc   : > { %495 = sbr.rel (%p492_p3) target bundleno = 3133 (0xc3d), region = 68 }
  0x13   : > { %s2901_s30 = scalar_select %p586_p4, %s2783_s25, 1 }
  0x14   : > { %622 = sbr.rel (%p2315_p5) target bundleno = 27 (0x1b), region = 72  ;;  %v623_v0 = vld [vmem:[%s3318_s0] sm:$0xff] (!%p2315_p5)  ;;  %vm625_vm0 = vcmask (!%p2315_p5), 261120   ;;  %v624_v1 = vld [vmem:[%s3318_s0 + $0x8] sm:$0xff] (!%p2315_p5) }
  0x15   : > { %s2410_s14 = sshll.u32 %s2901_s30, 4  ;;  %s2312_s24 = sshll.u32 %s2901_s30, 3  ;;  %626 = vst.msk [vmem:[#allocation4] sm:$0xff] (!%p2315_p5), %vm625_vm0, %v623_v0  ;;  %627 = vst.msk [vmem:[#allocation4 + $0x8] sm:$0xff] (!%p2315_p5), %vm625_vm0, %v624_v1 }
  0x16   : > { %s590_s20 = scalar_lea.vmem %s3321_s3, %s2410_s14  ;;  %s2914_s23 = scalar_lea.vmem %s3323_s5, %s2410_s14 }
  0x17   : > { %s2599_s28 = smul.u32 48, %s2901_s30  ;;  %s2921_s13 = scalar_lea.vmem %s3324_s6, %s2312_s24 }
  0x18   : > { %s610_s15 = scalar_lea.vmem %s3326_s8, %s2901_s30  ;;  %s2600_s19 = smul.u32 96, %s2901_s30 }
  0x19   : > { %s2930_s18 = scalar_lea.vmem %s3325_s7, %s2599_s28 }
  0x1a   : > { %s2936_s22 = scalar_lea.vmem %s3327_s9, %s2600_s19 }
  0x1b PF: > { %v2659_v2 = vld [vmem:[%s590_s20] sm:$0xff]   ;;  %v2793_v3 = vmov 0.0   ;;  %v2660_v4 = vld [vmem:[%s590_s20 + $0x8] sm:$0xff]   ;;  %vm2794_vm1 = vmmov 0   ;;  %v2795_v8 = vmov 0   ;;  %vm659_vm2 = vcmask 261120   ;;  %s3341_s21 = scalar_lea.vmem %s3322_s4, %s2901_s30 }
  0x1c   : > { %2467 = vmatprep.subr.bf16.mxu0 %v2793_v3  ;;  %2475 = vmatprep.subr.bf16.mxu1 %v2793_v3  ;;  %v2951_v5 = vld [vmem:[#allocation4] sm:$0xff]  ;;  %v2953_v6 = vld [vmem:[#allocation4 + $0x8] sm:$0xff]  ;;  %s2796_s14 = smov 96   ;;  %s2797_s26 = smov 64   ;;  %vm738_vm3 = vcmask 130048   ;;  %vm863_vm4 = vcmask 1043456  }
  0x1d   : > { %2468 = vmatpush3.bf16.msra.mxu0 %v2659_v2  ;;  %2471 = vmatprep.mubr.msk.bf16.mxu0 %vm2794_vm1, %v2793_v3  ;;  %v630_v7 = vld [vmem:[%s3319_s1] sm:$0xff]  ;;  %v635_v9 = vpack.c.bf16 %v2953_v6, %v2951_v5  ;;  %v631_v10 = vld [vmem:[%s3319_s1 + $0x8] sm:$0xff]  ;;  %vm835_vm6 = vcmask 64512   ;;  %s2798_s17 = smov 80   ;;  %s2799_s20 = smov 112   ;;  %vm1298_vm8 = vcmask (!%p2315_p5), 253952  }
  0x1e   : > { %2469 = vmatprep.subr.bf16.mxu0 %v2793_v3  ;;  %2652 = vset.pattern.permute.xlu1 %v2795_v8  ;;  %v2316_v11 = vld [vmem:[%s3341_s21] ss:$0 sm:$0xff]  ;;  %v2323_v32 = vld [vmem:[%s3320_s2 + $0x1] ss:$0 sm:$0xff]  ;;  %s2800_s24 = smov 48   ;;  %s2801_s16 = smov 16  }
  0x1f   : > { %712 = vperm.xlu1 %2652, %v630_v7   ;;  %2477 = vmatprep.mubr.msk.bf16.mxu1 %vm2794_vm1, %v2793_v3  ;;  %v2322_v30 = vld [vmem:[%s3320_s2] ss:$0 sm:$0xff]  ;;  %vm1299_vm9 = vsmask.f32 (!%p2315_p5), 256  ;;  %vm1307_vm10 = vcmask (!%p2315_p5), 516096  }
  0x20   : > { %2658 = vset.pattern.permute.xlu0 %v2795_v8  ;;  %vm1300_vm11 = vmand (!%p2315_p5), %vm1298_vm8, %vm1299_vm9  ;;  %vm1315_vm12 = vsmask.f32 (!%p2315_p5), 7938 }
  0x21   : > { %2470 = vmatpush3.bf16.msra.mxu0 %v2660_v4  ;;  %vm1308_vm13 = vmand (!%p2315_p5), %vm1307_vm10, %vm1299_vm9 }
  0x22   : > { %2481 = vmatprep.subr.bf16.mxu0 %v2793_v3  ;;  %vm1316_vm14 = vmand (!%p2315_p5), %vm1298_vm8, %vm1315_vm12 }
  0x23   : > { %717 = vperm.xlu1 %2652, %v631_v10   ;;  %vm1323_vm15 = vmand (!%p2315_p5), %vm1307_vm10, %vm1315_vm12 }
  0x24   : > { %2472 = vmatmul.mubr.msk.bf16.vlgmr.msra.gmra.mrb[0].mxu0 %vm659_vm2, %v635_v9 }
  0x25   : > { %2483 = vmatprep.mubr.msk.bf16.mxu0 %vm2794_vm1, %v2793_v3 }
  0x9e   : > { %v2983_v20 = vpop.permute.xlu1 %712 }
  0x9f   : > { %v3007_v31 = vmul.f32 %v2322_v30, %v2983_v20 }
  0xa1   : > { %vm734_vm5 = vcmp.gt.f32.partialorder %v3007_v31, 0.0 }
  0xa2   : > { %v2987_v23 = vpop.permute.xlu1 %717 }
  0xa3   : > { %v3014_v33 = vmul.f32 %v2323_v32, %v2987_v23 }
  0xa5   : > { %vm735_vm7 = vcmp.gt.f32.partialorder %v3014_v33, 0.0 }
  0xf7   : > { %v697_v12 = vpop.f32.mrb[0].mxu0 }
  0xf8   : > { %v698_v13 = vadd.f32 %v2316_v11, %v697_v12  ;;  %v2473_v14 = vpop.f32.mrb[1].mxu0 }
  0xf9   : > { %v700_v15 = vpop.f32.mrb[2].mxu0 }
  0xfa   : > { %v2975_v16 = vpack.c.bf16 %v698_v13, %v698_v13  ;;  %v701_v17 = vadd.f32 %v2316_v11, %v700_v15  ;;  %v2474_v18 = vpop.f32.mrb[3].mxu0 }
  0xfc   : > { %v2977_v19 = vpack.c.bf16 %v701_v17, %v701_v17  ;;  %736 = vrot.lane.b32.xlu0 %v2975_v16, %s2796_s14 }
  0xfe   : > { %907 = vrot.lane.b32.xlu1 %v2977_v19, %s2797_s26 }
 0x100   : > { %785 = vrot.lane.b32.xlu0 %v2977_v19, %s2796_s14 }
 0x104   : > { %858 = vrot.lane.b32.xlu0 %v2975_v16, %s2797_s26 }
 0x16e   : > { %v737_v21 = vpop.permute.xlu0 %736 }
 0x16f   : > { %v743_v22 = vsel %vm738_vm3, %v737_v21, 0 }
 0x170   : > { %2476 = vmatpush3.bf16.xpose.msra.mxu1 %v743_v22  ;;  %v908_v28 = vpop.permute.xlu1 %907 }
 0x171   : > { %2487 = vmatprep.subr.bf16.mxu1 %v2793_v3  ;;  %v913_v29 = vsel %vm863_vm4, %v908_v28, 0 }
 0x172   : > { %v786_v24 = vpop.permute.xlu0 %785 }
 0x173   : > { %v791_v25 = vsel %vm738_vm3, %v786_v24, 0 }
 0x174   : > { %2482 = vmatpush3.bf16.xpose.msra.mxu0 %v791_v25 }
 0x175   : > { %2493 = vmatprep.subr.bf16.mxu0 %v2793_v3 }
 0x176   : > { %v859_v26 = vpop.permute.xlu0 %858 }
 0x177   : > { %v865_v27 = vsel %vm863_vm4, %v859_v26, 0  ;;  %2478 = vmatmul.mubr.msk.bf16.vlgmr.msra.gmra.mrb[0].mxu1 %vm738_vm3, %v2975_v16 }
 0x178   : > { %2488 = vmatpush3.bf16.msra.mxu1 %v865_v27  ;;  %2489 = vmatprep.mubr.msk.bf16.mxu1 %vm2794_vm1, %v2793_v3 }
 0x179   : > { %2499 = vmatprep.subr.bf16.mxu1 %v2793_v3 }
 0x17b   : > { %2484 = vmatmul.mubr.msk.bf16.vlgmr.msra.gmra.mrb[4].mxu0 %vm738_vm3, %v2977_v19 }
 0x17c   : > { %2494 = vmatpush3.bf16.msra.mxu0 %v913_v29  ;;  %2495 = vmatprep.mubr.msk.bf16.mxu0 %vm2794_vm1, %v2793_v3 }
 0x17d   : > { %2505 = vmatprep.subr.bf16.mxu0 %v2793_v3 }
 0x24a   : > { %v779_v34 = vpop.f32.mrb[0].mxu1 }
 0x24b   : > { %v833_v35 = vsel %vm734_vm5, %v779_v34, -10000.0  ;;  %v2479_v36 = vpop.f32.mrb[1].mxu1 }
 0x24c   : > { %v782_v37 = vpop.f32.mrb[2].mxu1  ;;  %v836_v38 = vsel %vm835_vm6, %v833_v35, -inf }
 0x24d   : > { %v2480_v39 = vpop.f32.mrb[3].mxu1  ;;  %837 = vmax.xlane.f32.xlu0 %v836_v38 }
 0x24e   : > { %v827_v40 = vpop.f32.mrb[4].mxu0 }
 0x24f   : > { %v834_v41 = vsel %vm735_vm7, %v827_v40, -10000.0  ;;  %v2485_v42 = vpop.f32.mrb[5].mxu0 }
 0x250   : > { %v830_v43 = vpop.f32.mrb[6].mxu0  ;;  %v839_v44 = vsel %vm835_vm6, %v834_v41, -inf }
 0x251   : > { %840 = vmax.xlane.f32.xlu1 %v839_v44  ;;  %v2486_v45 = vpop.f32.mrb[7].mxu0  ;;  %v2662_v44 = vld [vmem:[%s2914_s23 + $0x8] sm:$0xff]  }
 0x262   : > { %1009 = vrot.lane.b32.xlu1 %v2977_v19, %s2798_s17 }
 0x263   : > { %959 = vrot.lane.b32.xlu0 %v2975_v16, %s2798_s17 }
 0x266   : > { %1007 = vrot.lane.b32.xlu1 %v2977_v19, %s2799_s20 }
 0x267   : > { %957 = vrot.lane.b32.xlu0 %v2975_v16, %s2799_s20 }
 0x2da   : > { %v838_v46 = vpop.xlane.xlu0 %837 }
 0x2db   : > { %v842_v47 = vsub.f32 %v833_v35, %v838_v46 }
 0x2dd   : > { %v844_v48 = vmul.f32 1.442695, %v842_v47 }
 0x2de   : > { %v841_v49 = vpop.xlane.xlu1 %840  ;;  %v960_v53 = vpop.permute.xlu0 %959 }
 0x2df   : > { %2663 = vpow2.f32 %v844_v48  ;;  %v843_v50 = vsub.f32 %v834_v41, %v841_v49  ;;  %v965_v55 = vsel %vm738_vm3, %v960_v53, 0  ;;  %v2661_v41 = vld [vmem:[%s2914_s23] sm:$0xff]  }
 0x2e1   : > { %v846_v51 = vmul.f32 1.442695, %v843_v50 }
 0x2e2   : > { %v1010_v57 = vpop.permute.xlu1 %1009  ;;  %v958_v60 = vpop.permute.xlu0 %957 }
 0x2e3   : > { %2665 = vpow2.f32 %v846_v51  ;;  %v1015_v59 = vsel %vm738_vm3, %v1010_v57, 0 }
 0x2e6   : > { %v1008_v61 = vpop.permute.xlu1 %1007 }
 0x2e9   : > { %v3027_v52 = vpop.eup %2663 }
 0x2ea   : > { %v856_v54 = vpack.c.bf16 %v3027_v52, %v3027_v52  ;;  %v848_v37 = vsel %vm835_vm6, %v3027_v52, 0.0 }
 0x2ec   : > { %2490 = vmatmul.mubr.msk.bf16.vlgmr.msra.gmra.mrb[4].mxu1 %vm835_vm6, %v856_v54 }
 0x2ed   : > { %v3033_v56 = vpop.eup %2665  ;;  %2500 = vmatpush3.bf16.xpose.msra.mxu1 %v965_v55  ;;  %2501 = vmatprep.mubr.msk.bf16.mxu1 %vm2794_vm1, %v2793_v3 }
 0x2ee   : > { %v857_v58 = vpack.c.bf16 %v3033_v56, %v3033_v56  ;;  %2511 = vmatprep.subr.bf16.mxu1 %v2793_v3  ;;  %v851_v40 = vsel %vm835_vm6, %v3033_v56, 0.0 }
 0x2f0   : > { %2496 = vmatmul.mubr.msk.bf16.vlgmr.msra.gmra.mrb[8].mxu0 %vm835_vm6, %v857_v58 }
 0x2f1   : > { %2506 = vmatpush3.bf16.xpose.msra.mxu0 %v1015_v59  ;;  %2507 = vmatprep.mubr.msk.bf16.mxu0 %vm2794_vm1, %v2793_v3 }
 0x2f2   : > { %2517 = vmatprep.subr.bf16.mxu0 %v2793_v3 }
 0x2f4   : > { %2502 = vmatmul.mubr.msk.bf16.vlgmr.msra.gmra.mrb[8].mxu1 %vm738_vm3, %v958_v60 }
 0x2f5   : > { %2513 = vmatprep.mubr.msk.bf16.mxu1 %vm2794_vm1, %v2793_v3 }
 0x2f8   : > { %2508 = vmatmul.mubr.msk.bf16.vlgmr.msra.gmra.mrb[12].mxu0 %vm738_vm3, %v1008_v61 }
 0x2f9   : > { %2519 = vmatprep.mubr.msk.bf16.mxu0 %vm2794_vm1, %v2793_v3 }
 0x3bf   : > { %v3051_v62 = vpop.f32.mrb[4].mxu1 }
 0x3c0   : > { %v2491_v63 = vpop.f32.mrb[5].mxu1 }
 0x3c1   : > { %v904_v0 = vpop.f32.mrb[6].mxu1 }
 0x3c2   : > { %v2492_v1 = vpop.f32.mrb[7].mxu1 }
 0x3c3   : > { %v3053_v2 = vpop.f32.mrb[8].mxu0 }
 0x3c4   : > { %v2497_v4 = vpop.f32.mrb[9].mxu0 }
 0x3c5   : > { %v952_v7 = vpop.f32.mrb[10].mxu0 }
 0x3c6   : > { %v2498_v8 = vpop.f32.mrb[11].mxu0 }
 0x3c7   : > { %v1001_v9 = vpop.f32.mrb[8].mxu1 }
 0x3c8   : > { %v1057_v10 = vsel %vm734_vm5, %v1001_v9, -10000.0  ;;  %v2503_v11 = vpop.f32.mrb[9].mxu1 }
 0x3c9   : > { %v1004_v12 = vpop.f32.mrb[10].mxu1  ;;  %v1059_v13 = vsel %vm835_vm6, %v1057_v10, -inf  ;;  %v1194_v11 = vlaneseq }
 0x3ca   : > { %1060 = vmax.xlane.f32.xlu0 %v1059_v13  ;;  %v2504_v14 = vpop.f32.mrb[11].mxu1 }
 0x3cb   : > { %v1051_v15 = vpop.f32.mrb[12].mxu0  ;;  %v3084_v12 = vshrl.u32 %v1194_v11, 7  ;;  %v3088_v14 = vld [vmem:[%s2921_s13] sm:$0x3f] }
 0x3cc   : > { %v1058_v17 = vsel %vm735_vm7, %v1051_v15, -10000.0  ;;  %v2509_v18 = vpop.f32.mrb[13].mxu0 }
 0x3cd   : > { %v1054_v21 = vpop.f32.mrb[14].mxu0  ;;  %v1062_v22 = vsel %vm835_vm6, %v1058_v17, -inf  ;;  %v1196_v13 = vsub.s32 0, %v3084_v12 }
 0x3ce   : > { %1063 = vmax.xlane.f32.xlu1 %v1062_v22  ;;  %v2510_v24 = vpop.f32.mrb[15].mxu0 }
 0x3df   : > { %1129 = vrot.lane.b32.xlu1 %v2977_v19, %s2800_s24 }
 0x3e0   : > { %1081 = vrot.lane.b32.xlu0 %v2975_v16, %s2800_s24 }
 0x457   : > { %v1061_v25 = vpop.xlane.xlu0 %1060 }
 0x458   : > { %v1065_v26 = vsub.f32 %v1057_v10, %v1061_v25 }
 0x45a   : > { %v1067_v27 = vmul.f32 1.442695, %v1065_v26 }
 0x45b   : > { %v1082_v28 = vpop.permute.xlu0 %1081  ;;  %v1064_v29 = vpop.xlane.xlu1 %1063 }
 0x45c   : > { %2667 = vpow2.f32 %v1067_v27  ;;  %v1087_v30 = vsel %vm863_vm4, %v1082_v28, 0  ;;  %v1066_v31 = vsub.f32 %v1058_v17, %v1064_v29 }
 0x45d   : > { %2512 = vmatpush3.bf16.msra.mxu1 %v1087_v30 }
 0x45e   : > { %v1069_v32 = vmul.f32 1.442695, %v1066_v31  ;;  %2523 = vmatprep.subr.bf16.mxu1 %v2793_v3 }
 0x45f   : > { %v1130_v33 = vpop.permute.xlu1 %1129 }
 0x460   : > { %2669 = vpow2.f32 %v1069_v32  ;;  %v1135_v34 = vsel %vm863_vm4, %v1130_v33, 0 }
 0x461   : > { %2518 = vmatpush3.bf16.msra.mxu0 %v1135_v34 }
 0x466   : > { %v2668_v16 = vpop.eup %2667 }
 0x467   : > { %v1071_v19 = vsel %vm835_vm6, %v2668_v16, 0.0  ;;  %v1079_v35 = vpack.c.bf16 %v2668_v16, %v2668_v16 }
 0x468   : > { %1072 = vadd.xlane.f32.xlu0 %v1071_v19 }
 0x469   : > { %2514 = vmatmul.mubr.msk.bf16.vlgmr.msra.gmra.mrb[12].mxu1 %vm835_vm6, %v1079_v35 }
 0x46a   : > { %v2670_v36 = vpop.eup %2669  ;;  %2527 = vmatprep.mubr.msk.bf16.mxu1 %vm2794_vm1, %v2793_v3  ;;  %2524 = vmatpush3.bf16.msra.mxu1 %v2661_v41  ;;  %v1291_v41 = vsub.s32 2, %v3084_v12 }
 0x46b   : > { %v1074_v38 = vsel %vm835_vm6, %v2670_v36, 0.0  ;;  %v1080_v39 = vpack.c.bf16 %v2670_v36, %v2670_v36  ;;  %2525 = vmatprep.subr.bf16.mxu1 %v2793_v3 }
 0x46c   : > { %849 = vadd.xlane.f32.xlu0 %v848_v37  ;;  %1075 = vadd.xlane.f32.xlu1 %v1074_v38 }
 0x46d   : > { %2520 = vmatmul.mubr.msk.bf16.vlgmr.msra.gmra.mrb[16].mxu0 %vm835_vm6, %v1080_v39 }
 0x46e   : > { %2526 = vmatpush3.bf16.msra.mxu1 %v2662_v44  ;;  %v1292_v44 = vrot.slane %v3088_v14, %v1291_v41 }
 0x470   : > { %852 = vadd.xlane.f32.xlu0 %v851_v40  ;;  %v1285_v40 = vsub.s32 1, %v3084_v12 }
 0x4f5   : > { %v1073_v42 = vpop.xlane.xlu0 %1072 }
 0x4f6   : > { %2671 = vrcp.f32 %v1073_v42  ;;  %v1286_v42 = vrot.slane %v3088_v14, %v1285_v40 }
 0x4f9   : > { %v1076_v43 = vpop.xlane.xlu1 %1075  ;;  %v850_v58 = vpop.xlane.xlu0 %849 }
 0x4fa   : > { %2673 = vrcp.f32 %v1076_v43 }
 0x4fb   : > { %2675 = vrcp.f32 %v850_v58  ;;  %v1317_v58 = vld [vmem:[#allocation2 + $0x4] sm:$0x1] (!%p2315_p5) }
 0x4fd   : > { %v853_v59 = vpop.xlane.xlu0 %852 }
 0x4fe   : > { %2677 = vrcp.f32 %v853_v59 }
 0x500   : > { %v2672_v48 = vpop.eup %2671 }
 0x504   : > { %v2674_v50 = vpop.eup %2673 }
 0x505   : > { %v2676_v60 = vpop.eup %2675 }
 0x506   : > { %v955_v0 = vmul.f32 %v2676_v60, %v3051_v62  ;;  %v1197_v62 = vrot.slane %v3088_v14, %v1196_v13 }
 0x508   : > { %v2678_v61 = vpop.eup %2677 }
 0x509   : > { %v956_v1 = vmul.f32 %v2678_v61, %v3053_v2  ;;  %v1320_v61 = vld [vmem:[#allocation2 + $0xc] sm:$0x1] (!%p2315_p5) }
 0x53c   : > { %v1123_v45 = vpop.f32.mrb[12].mxu1 }
 0x53d   : > { %v2515_v46 = vpop.f32.mrb[13].mxu1  ;;  %v1177_v52 = vmul.f32 %v2672_v48, %v1123_v45 }
 0x53e   : > { %v1126_v47 = vpop.f32.mrb[14].mxu1 }
 0x53f   : > { %v2516_v49 = vpop.f32.mrb[15].mxu1 }
 0x540   : > { %v1171_v51 = vpop.f32.mrb[16].mxu0 }
 0x541   : > { %v1178_v53 = vmul.f32 %v2674_v50, %v1171_v51  ;;  %v2521_v54 = vpop.f32.mrb[17].mxu0 }
 0x542   : > { %v1174_v55 = vpop.f32.mrb[18].mxu0  ;;  %v1309_v54 = vld [vmem:[#allocation3] sm:$0x1] (!%p2315_p5) }
 0x543   : > { %v2653_v56 = vpack.i.bf16 %v1178_v53, %v1177_v52  ;;  %v2522_v57 = vpop.f32.mrb[19].mxu0  ;;  %v1301_v52 = vld [vmem:[#allocation2] sm:$0x1] (!%p2315_p5)  ;;  %v1304_v53 = vld [vmem:[#allocation2 + $0x8] sm:$0x1] (!%p2315_p5)  ;;  %v1310_v59 = vsel (!%p2315_p5), %vm1308_vm13, 0, %v1309_v54 }
 0x544   : > { %v1302_v55 = vsel (!%p2315_p5), %vm1300_vm11, 0, %v1301_v52  ;;  %v1312_v57 = vld [vmem:[#allocation3 + $0x8] sm:$0x1] (!%p2315_p5)  ;;  %1311 = vst [vmem:[#allocation3] sm:$0x1] (!%p2315_p5), %v1310_v59 }
 0x545   : > { %2654 = vrot.lane.b32.xlu1 %v2653_v56, %s2801_s16  ;;  %v1305_v56 = vsel (!%p2315_p5), %vm1300_vm11, 0, %v1304_v53  ;;  %1303 = vst [vmem:[#allocation2] sm:$0x1] (!%p2315_p5), %v1302_v55  ;;  %v1313_v60 = vsel (!%p2315_p5), %vm1308_vm13, 0, %v1312_v57 }
 0x546   : > { %1306 = vst [vmem:[#allocation2 + $0x8] sm:$0x1] (!%p2315_p5), %v1305_v56  ;;  %1314 = vst [vmem:[#allocation3 + $0x8] sm:$0x1] (!%p2315_p5), %v1313_v60 }
 0x5b7   : > { %v2655_v63 = vpop.permute.xlu1 %2654 }
 0x5b8   : > { %v2657_v4 = vunpack.i.h.bf16 %v2655_v63  ;;  %v2656_v7 = vunpack.i.l.bf16 %v2655_v63  ;;  %v1324_v63 = vld [vmem:[#allocation3 + $0x4] sm:$0x1] (!%p2315_p5) }
 0x5ba   : > { %v1188_v8 = vsel %vm738_vm3, %v956_v1, %v2657_v4  ;;  %v1187_v9 = vsel %vm738_vm3, %v955_v0, %v2656_v7  ;;  %v1318_v0 = vsel (!%p2315_p5), %vm1316_vm14, 0, %v1317_v58  ;;  %v1321_v1 = vsel (!%p2315_p5), %vm1316_vm14, 0, %v1320_v61  ;;  %v1327_v4 = vld [vmem:[#allocation3 + $0xc] sm:$0x1] (!%p2315_p5) }
 0x5bb   : > { %v1189_v10 = vpack.c.bf16 %v1188_v8, %v1187_v9  ;;  %1319 = vst [vmem:[#allocation2 + $0x4] sm:$0x1] (!%p2315_p5), %v1318_v0  ;;  %1322 = vst [vmem:[#allocation2 + $0xc] sm:$0x1] (!%p2315_p5), %v1321_v1  ;;  %v1325_v7 = vsel (!%p2315_p5), %vm1323_vm15, 0, %v1324_v63  ;;  %v1328_v8 = vsel (!%p2315_p5), %vm1323_vm15, 0, %v1327_v4 }
 0x5bc   : > { %1326 = vst [vmem:[#allocation3 + $0x4] sm:$0x1] (!%p2315_p5), %v1325_v7  ;;  %1329 = vst [vmem:[#allocation3 + $0xc] sm:$0x1] (!%p2315_p5), %v1328_v8 }
 0x5bd   : > { %2528 = vmatmul.mubr.msk.bf16.vlgmr.msra.gmra.mrb[16].mxu1 %vm659_vm2, %v1189_v10 }
 0x690   : > { %v1247_v15 = vpop.f32.mrb[16].mxu1 }
 0x691   : > { %v1248_v2 = vadd.f32 %v1247_v15, %v1197_v62  ;;  %v2529_v17 = vpop.f32.mrb[17].mxu1 }
 0x692   : > { %v1250_v18 = vpop.f32.mrb[18].mxu1 }
 0x693   : > { %v1251_v21 = vadd.f32 %v1250_v18, %v1197_v62  ;;  %v2530_v22 = vpop.f32.mrb[19].mxu1  ;;  %v1254_v24 = vadd.f32 %v1248_v2, %v2951_v5 }
 0x695   : > { %v1256_v25 = vsel %vm659_vm2, %v1254_v24, 0.0  ;;  %v1255_v26 = vadd.f32 %v1251_v21, %v2953_v6 }
 0x696   : > { %1257 = vadd.xlane.f32.xlu0 %v1256_v25 }
 0x697   : > { %v1259_v27 = vsel %vm659_vm2, %v1255_v26, 0.0 }
 0x69a   : > { %1260 = vadd.xlane.f32.xlu0 %v1259_v27 }
 0x723   : > { %v1258_v28 = vpop.xlane.xlu0 %1257 }
 0x724   : > { %v1263_v29 = vmul.f32 0.03125, %v1258_v28 }
 0x726   : > { %v1265_v30 = vsub.f32 %v1254_v24, %v1263_v29 }
 0x727   : > { %v1261_v31 = vpop.xlane.xlu0 %1260 }
 0x728   : > { %v1264_v32 = vmul.f32 0.03125, %v1261_v31  ;;  %v1267_v33 = vmul.f32 %v1265_v30, %v1265_v30 }
 0x72a   : > { %v1266_v34 = vsub.f32 %v1255_v26, %v1264_v32  ;;  %v1269_v16 = vsel %vm659_vm2, %v1267_v33, 0.0 }
 0x72b   : > { %1270 = vadd.xlane.f32.xlu0 %v1269_v16 }
 0x72c   : > { %v1268_v19 = vmul.f32 %v1266_v34, %v1266_v34 }
 0x72e   : > { %v1272_v5 = vsel %vm659_vm2, %v1268_v19, 0.0 }
 0x72f   : > { %1273 = vadd.xlane.f32.xlu0 %v1272_v5 }
 0x7b8   : > { %v1271_v35 = vpop.xlane.xlu0 %1270 }
 0x7b9   : > { %v1275_v6 = vmul.f32 0.03125, %v1271_v35 }
 0x7bb   : > { %v1277_v36 = vadd.f32 1e-05, %v1275_v6 }
 0x7bc   : > { %v1274_v37 = vpop.xlane.xlu0 %1273 }
 0x7bd   : > { %2679 = vrsqrt.f32 %v1277_v36  ;;  %v1276_v38 = vmul.f32 0.03125, %v1274_v37 }
 0x7bf   : > { %v1278_v39 = vadd.f32 1e-05, %v1276_v38 }
 0x7c1   : > { %2681 = vrsqrt.f32 %v1278_v39 }
 0x7c7   : > { %v2680_v43 = vpop.eup %2679 }
 0x7c8   : > { %v1281_v45 = vmul.f32 %v2680_v43, %v1265_v30 }
 0x7ca   : > { %v1287_v46 = vmul.f32 %v1286_v42, %v1281_v45  ;;  %1297 = sbr.rel (%p2315_p5) target bundleno = 2001 (0x7d1), region = 76 }
 0x7cb   : > { %v2682_v47 = vpop.eup %2681 }
 0x7cc   : > { %v3101_v48 = vadd.f32 %v1292_v44, %v1287_v46  ;;  %v1282_v49 = vmul.f32 %v2682_v47, %v1266_v34 }
 0x7ce   : > { %v1288_v50 = vmul.f32 %v1286_v42, %v1282_v49 }
 0x7d0   : > { %v3103_v51 = vadd.f32 %v1292_v44, %v1288_v50 }
 0x7d1 PF: > { %2531 = vmatprep.subr.bf16.mxu0 %v2793_v3  ;;  %v2683_v9 = vld [vmem:[%s2930_s18 + $0x10] sm:$0xff]   ;;  %2539 = vmatprep.subr.bf16.mxu1 %v2793_v3  ;;  %v1330_v10 = vmul.f32 %v3101_v48, %v2983_v20  ;;  %v2684_v13 = vld [vmem:[%s2930_s18] sm:$0xff]   ;;  %v2685_v62 = vld [vmem:[%s2930_s18 + $0x18] sm:$0xff]   ;;  %vm1360_vm0 = vcmask 257024   ;;  %vm1366_vm3 = vcmask 253952   ;;  %vm1548_vm12 = vcmask 1042432  }
 0x7d2   : > { %v1331_v11 = vmul.f32 %v3103_v51, %v2987_v23  ;;  %2535 = vmatprep.mubr.msk.bf16.mxu0 %vm2794_vm1, %v2793_v3  ;;  %2543 = vmatprep.mubr.msk.bf16.mxu1 %vm2794_vm1, %v2793_v3  ;;  %v2686_v17 = vld [vmem:[%s2930_s18 + $0x8] sm:$0xff]   ;;  %vm1361_vm4 = vsmask.f32 7938  ;;  %v1363_v25 = vld [vmem:[#allocation2] sm:$0xf]  ;;  %vm1549_vm13 = vcmask 1046532  }
 0x7d3   : > { %2532 = vmatpush3.bf16.msra.mxu0 %v2683_v9  ;;  %v2414_v15 = vpack.c.bf16 %v1330_v10, %v1330_v10  ;;  %2540 = vmatpush3.bf16.msra.mxu1 %v2684_v13  ;;  %vm1367_vm5 = vsmask.f32 256  ;;  %vm3131_vm7 = vmand %vm1360_vm0, %vm1361_vm4  ;;  %v1369_v29 = vld [vmem:[#allocation2 + $0x4] sm:$0x1]  ;;  %v1372_v30 = vld [vmem:[#allocation2 + $0x8] sm:$0xf] }
 0x7d4   : > { %v2415_v2 = vpack.c.bf16 %v1331_v11, %v1331_v11  ;;  %2533 = vmatprep.subr.bf16.mxu0 %v2793_v3  ;;  %2541 = vmatprep.subr.bf16.mxu1 %v2793_v3  ;;  %vm1368_vm8 = vmand %vm1366_vm3, %vm1367_vm5  ;;  %v1375_v31 = vld [vmem:[#allocation2 + $0xc] sm:$0x1]  ;;  %vm1386_vm9 = vsmask.f32 3328  ;;  %vm1387_vm10 = vsmask.f32 7440 }
 0x7d5   : > { %v1341_v18 = vshrl.u32 %v2414_v15, 16  ;;  %v1344_v21 = vshll.u32 %v2414_v15, 16  ;;  %vm3143_vm11 = vmor %vm1386_vm9, %vm1387_vm10  ;;  %v2688_v7 = vld [vmem:[%s2930_s18 + $0x20] sm:$0xff]   ;;  %v2689_v13 = vld [vmem:[%s2930_s18 + $0x28] sm:$0xff]   ;;  %vm1666_vm15 = vcmask 519168   ;;  %vm1671_vm0 = vcmask 516096  }
 0x7d6   : > { %v1349_v22 = vshrl.u32 %v2415_v2, 16  ;;  %v1352_v24 = vshll.u32 %v2415_v2, 16  ;;  %vm3155_vm14 = vmor %vm1548_vm12, %vm1549_vm13  ;;  %p2399_p6 = scmp.ne.s32.totalorder %s2783_s25, 1 }
 0x7d7   : > { %2534 = vmatpush3.bf16.msra.mxu0 %v2685_v62  ;;  %v1343_v26 = vrot.slane %v1341_v18, 7  ;;  %2542 = vmatpush3.bf16.msra.mxu1 %v2686_v17  ;;  %v2690_v17 = vld [vmem:[%s2936_s22] sm:$0xff]   ;;  %v2691_v18 = vld [vmem:[%s2936_s22 + $0x8] sm:$0xff]   ;;  %vm3195_vm3 = vmand %vm1666_vm15, %vm1361_vm4  ;;  %vm1758_vm4 = vcmask 523264  }
 0x7d8   : > { %v1351_v27 = vrot.slane %v1349_v22, 7  ;;  %2547 = vmatprep.subr.bf16.mxu0 %v2793_v3  ;;  %2555 = vmatprep.subr.bf16.mxu1 %v2793_v3  ;;  %v2693_v22 = vld [vmem:[%s2936_s22 + $0x10] sm:$0xff]  }
 0x7d9   : > { %v1346_v32 = vor.u32 %v1344_v21, %v1343_v26  ;;  %v1347_v33 = vrot.slane %v1343_v26, 4  ;;  %v2692_v21 = vld [vmem:[%s2936_s22 + $0x20] sm:$0xff]   ;;  %v2697_v26 = vld [vmem:[%s2936_s22 + $0x30] sm:$0xff]  }
 0x7da   : > { %v1354_v34 = vor.u32 %v1352_v24, %v1351_v27  ;;  %v1355_v16 = vrot.slane %v1351_v27, 4  ;;  %v2694_v24 = vld [vmem:[%s2936_s22 + $0x28] sm:$0xff]   ;;  %v2698_v27 = vld [vmem:[%s2936_s22 + $0x38] sm:$0xff]  }
 0x7db   : > { %v1364_v19 = vsel %vm3131_vm7, %v1346_v32, %v1363_v25  ;;  %v1370_v5 = vsel %vm1368_vm8, %v1347_v33, %v1369_v29  ;;  %v2695_v25 = vld [vmem:[%s2936_s22 + $0x18] sm:$0xff]  }
 0x7dc   : > { %v1373_v35 = vsel %vm3131_vm7, %v1354_v34, %v1372_v30  ;;  %v1376_v6 = vsel %vm1368_vm8, %v1355_v16, %v1375_v31  ;;  %1365 = vst [vmem:[#allocation2] sm:$0xf] %v1364_v19  ;;  %1371 = vst [vmem:[#allocation2 + $0x4] sm:$0x1] %v1370_v5 }
 0x7dd   : > { %1374 = vst [vmem:[#allocation2 + $0x8] sm:$0xf] %v1373_v35  ;;  %1377 = vst [vmem:[#allocation2 + $0xc] sm:$0x1] %v1376_v6  ;;  %v2360_v6 = vld [vmem:[%s610_s15] ss:$0 sm:$0xff] }
 0x7de   : > { %vm1672_vm7 = vmand %vm1671_vm0, %vm1367_vm5 }
 0x7e3   : > { %v1378_v36 = vld [vmem:[#allocation2] sm:$0xf]  ;;  %v1384_v38 = vld [vmem:[#allocation2 + $0x4] sm:$0x1] }
 0x7e4   : > { %v1379_v37 = vld [vmem:[#allocation2 + $0x8] sm:$0xf]  ;;  %v1385_v39 = vld [vmem:[#allocation2 + $0xc] sm:$0x1]  ;;  %v1390_v40 = vshrl.u32 %v1378_v36, 16  ;;  %v1393_v41 = vshll.u32 %v1378_v36, 16 }
 0x7e5   : > { %v1399_v42 = vshll.u32 %v1384_v38, 16  ;;  %v1404_v43 = vshrl.u32 %v1379_v37, 16  ;;  %v1407_v44 = vshll.u32 %v1379_v37, 16  ;;  %v1413_v45 = vshll.u32 %v1385_v39, 16  ;;  %v1542_v59 = vld [vmem:[#allocation2] sm:$0xe] }
 0x7e6   : > { %v1392_v46 = vrot.slane %v1390_v40, 4  ;;  %v1395_v47 = vrot.slane %v1393_v41, 5  ;;  %v2346_v52 = vcombine.low %v1378_v36, %v1379_v37  ;;  %v1543_v60 = vld [vmem:[#allocation2 + $0x8] sm:$0xe]  ;;  %v1553_v0 = vrot.slane %v1384_v38, 5 }
 0x7e7   : > { %v1406_v49 = vrot.slane %v1404_v43, 4  ;;  %v1409_v50 = vrot.slane %v1407_v44, 5  ;;  %v1401_v54 = vrot.slane %v1399_v42, 5  ;;  %v1415_v57 = vrot.slane %v1413_v45, 5 }
 0x7e8   : > { %v1396_v53 = vor.u32 %v1395_v47, %v1392_v46  ;;  %2544 = vmatmul.mubr.msk.bf16.vlgmr.msra.gmra.mrb[20].mxu1 %vm659_vm2, %v2346_v52  ;;  %v1557_v4 = vrot.slane %v1385_v39, 5  ;;  %v2350_v8 = vrot.slane %v1542_v59, 9  ;;  %v2351_v9 = vrot.slane %v1543_v60, 9 }
 0x7e9   : > { %v1410_v56 = vor.u32 %v1409_v50, %v1406_v49  ;;  %2563 = vmatprep.mubr.msk.bf16.mxu1 %vm2794_vm1, %v2793_v3  ;;  %2556 = vmatpush3.bf16.msra.mxu1 %v2692_v21 }
 0x7ea   : > { %v1397_v58 = vrot.slane %v1396_v53, 4  ;;  %v1554_v62 = vsel %vm3155_vm14, %v2350_v8, %v1553_v0  ;;  %v1558_v15 = vsel %vm3155_vm14, %v2351_v9, %v1557_v4  ;;  %2557 = vmatprep.subr.bf16.mxu1 %v2793_v3  ;;  %v1676_v0 = vld [vmem:[#allocation3 + $0x8] sm:$0xf] }
 0x7eb   : > { %v1411_v61 = vrot.slane %v1410_v56, 4  ;;  %v2356_v2 = vcombine.low %v1554_v62, %v1558_v15 }
 0x7ec   : > { %v1402_v63 = vsel %vm3143_vm11, %v1397_v58, %v1401_v54  ;;  %v1673_v58 = vld [vmem:[#allocation3 + $0x4] sm:$0x1] }
 0x7ed   : > { %v1416_v1 = vsel %vm3143_vm11, %v1411_v61, %v1415_v57  ;;  %2558 = vmatpush3.bf16.msra.mxu1 %v2694_v24  ;;  %v1668_v57 = vld [vmem:[#allocation3] sm:$0xf] }
 0x7ee   : > { %v2342_v10 = vcombine.low %v1402_v63, %v1416_v1  ;;  %2559 = vmatprep.subr.bf16.mxu1 %v2793_v3  ;;  %v1679_v1 = vld [vmem:[#allocation3 + $0xc] sm:$0x1] }
 0x7f0   : > { %2536 = vmatmul.mubr.msk.bf16.vlgmr.msra.gmra.mrb[20].mxu0 %vm659_vm2, %v2342_v10 }
 0x7f1   : > { %2548 = vmatpush3.bf16.msra.mxu0 %v2688_v7  ;;  %2551 = vmatprep.mubr.msk.bf16.mxu0 %vm2794_vm1, %v2793_v3 }
 0x7f2   : > { %2549 = vmatprep.subr.bf16.mxu0 %v2793_v3  ;;  %2560 = vmatpush3.bf16.msra.mxu1 %v2697_v26 }
 0x7f3   : > { %2561 = vmatprep.subr.bf16.mxu1 %v2793_v3 }
 0x7f5   : > { %2550 = vmatpush3.bf16.msra.mxu0 %v2689_v13 }
 0x7f6   : > { %2567 = vmatprep.subr.bf16.mxu0 %v2793_v3  ;;  %2562 = vmatpush3.bf16.msra.mxu1 %v2698_v27 }
 0x7f7   : > { %2579 = vmatprep.subr.bf16.mxu1 %v2793_v3 }
 0x7f8   : > { %2552 = vmatmul.mubr.msk.bf16.vlgmr.msra.gmra.mrb[24].mxu0 %vm659_vm2, %v2356_v2 }
 0x7f9   : > { %2575 = vmatprep.mubr.msk.bf16.mxu0 %vm2794_vm1, %v2793_v3  ;;  %2568 = vmatpush3.bf16.msra.mxu0 %v2690_v17 }
 0x7fa   : > { %2569 = vmatprep.subr.bf16.mxu0 %v2793_v3 }
 0x7fd   : > { %2570 = vmatpush3.bf16.msra.mxu0 %v2691_v18 }
 0x7fe   : > { %2571 = vmatprep.subr.bf16.mxu0 %v2793_v3 }
 0x801   : > { %2572 = vmatpush3.bf16.msra.mxu0 %v2693_v22 }
 0x802   : > { %2573 = vmatprep.subr.bf16.mxu0 %v2793_v3 }
 0x805   : > { %2574 = vmatpush3.bf16.msra.mxu0 %v2695_v25 }
 0x8bb   : > { %v1535_v28 = vpop.f32.mrb[20].mxu1 }
 0x8bc   : > { %v2545_v29 = vpop.f32.mrb[21].mxu1 }
 0x8bd   : > { %v1538_v30 = vpop.f32.mrb[22].mxu1 }
 0x8be   : > { %v2546_v31 = vpop.f32.mrb[23].mxu1 }
 0x8c3   : > { %v1474_v32 = vpop.f32.mrb[20].mxu0 }
 0x8c4   : > { %v1536_v33 = vadd.f32 %v1535_v28, %v1474_v32  ;;  %v2537_v34 = vpop.f32.mrb[21].mxu0 }
 0x8c5   : > { %v1477_v16 = vpop.f32.mrb[22].mxu0 }
 0x8c6   : > { %v1539_v19 = vadd.f32 %v1538_v30, %v1477_v16  ;;  %v2538_v5 = vpop.f32.mrb[23].mxu0 }
 0x8cb   : > { %v1616_v35 = vpop.f32.mrb[24].mxu0 }
 0x8cc   : > { %v1623_v36 = vadd.f32 %v1616_v35, %v1536_v33  ;;  %v2553_v37 = vpop.f32.mrb[25].mxu0 }
 0x8cd   : > { %v1619_v38 = vpop.f32.mrb[26].mxu0 }
 0x8ce   : > { %v1632_v39 = vadd.f32 %v2360_v6, %v1623_v36  ;;  %v1624_v40 = vadd.f32 %v1619_v38, %v1539_v19  ;;  %v2554_v41 = vpop.f32.mrb[27].mxu0  ;;  %v2699_v36 = vld [vmem:[%s2936_s22 + $0x40] sm:$0xff]   ;;  %v2700_v38 = vld [vmem:[%s2936_s22 + $0x48] sm:$0xff]  }
 0x8d0   : > { %v1634_v42 = vmax.f32 %v1632_v39, 0.0  ;;  %v1633_v43 = vadd.f32 %v2360_v6, %v1624_v40  ;;  %v2701_v40 = vld [vmem:[%s2936_s22 + $0x50] sm:$0xff]  }
 0x8d2   : > { %v1636_v44 = vmul.f32 %v1634_v42, %v2983_v20  ;;  %v1635_v45 = vmax.f32 %v1633_v43, 0.0  ;;  %v2702_v43 = vld [vmem:[%s2936_s22 + $0x58] sm:$0xff]  }
 0x8d4   : > { %v2416_v46 = vpack.c.bf16 %v1636_v44, %v1636_v44  ;;  %v1637_v47 = vmul.f32 %v1635_v45, %v2987_v23 }
 0x8d6   : > { %v1647_v49 = vshrl.u32 %v2416_v46, 16  ;;  %v2417_v50 = vpack.c.bf16 %v1637_v47, %v1637_v47  ;;  %v1650_v53 = vshll.u32 %v2416_v46, 16 }
 0x8d8   : > { %v1649_v52 = vrot.slane %v1647_v49, 7  ;;  %v1655_v56 = vshrl.u32 %v2417_v50, 16  ;;  %v1658_v63 = vshll.u32 %v2417_v50, 16 }
 0x8da   : > { %v1652_v59 = vor.u32 %v1650_v53, %v1649_v52  ;;  %v1653_v60 = vrot.slane %v1649_v52, 4  ;;  %v1657_v61 = vrot.slane %v1655_v56, 7 }
 0x8dc   : > { %v1669_v4 = vsel %vm3195_vm3, %v1652_v59, %v1668_v57  ;;  %v1674_v7 = vsel %vm1672_vm7, %v1653_v60, %v1673_v58  ;;  %v1660_v8 = vor.u32 %v1658_v63, %v1657_v61  ;;  %v1661_v9 = vrot.slane %v1657_v61, 4 }
 0x8dd   : > { %1670 = vst [vmem:[#allocation3] sm:$0xf] %v1669_v4  ;;  %1675 = vst [vmem:[#allocation3 + $0x4] sm:$0x1] %v1674_v7  ;;  %v1974_v61 = vsub.s32 3, %v3084_v12 }
 0x8de   : > { %v1677_v10 = vsel %vm3195_vm3, %v1660_v8, %v1676_v0  ;;  %v1680_v13 = vsel %vm1672_vm7, %v1661_v9, %v1679_v1 }
 0x8df   : > { %1678 = vst [vmem:[#allocation3 + $0x8] sm:$0xf] %v1677_v10  ;;  %1681 = vst [vmem:[#allocation3 + $0xc] sm:$0x1] %v1680_v13  ;;  %v1975_v63 = vrot.slane %v3088_v14, %v1974_v61 }
 0x8e4   : > { %v1682_v62 = vld [vmem:[#allocation3] sm:$0xf]  ;;  %v1692_v17 = vld [vmem:[#allocation3 + $0x4] sm:$0x1] }
 0x8e5   : > { %v1695_v15 = vshrl.u32 %v1682_v62, 16  ;;  %v1698_v2 = vshll.u32 %v1682_v62, 16  ;;  %v1704_v28 = vshll.u32 %v1692_v17, 16  ;;  %v1876_v41 = vld [vmem:[#allocation3] sm:$0xe]  ;;  %v1884_v45 = vrot.slane %v1692_v17, 5 }
 0x8e6   : > { %v1683_v18 = vld [vmem:[#allocation3 + $0x8] sm:$0xf]  ;;  %v1693_v21 = vld [vmem:[#allocation3 + $0xc] sm:$0x1]  ;;  %v2383_v44 = vrot.slane %v1876_v41, 9 }
 0x8e7   : > { %v1697_v22 = vrot.slane %v1695_v15, 4  ;;  %v1700_v24 = vrot.slane %v1698_v2, 5  ;;  %v1709_v25 = vshrl.u32 %v1683_v18, 16  ;;  %v1712_v26 = vshll.u32 %v1683_v18, 16  ;;  %v1877_v39 = vld [vmem:[#allocation3 + $0x8] sm:$0xe] }
 0x8e8   : > { %v2377_v27 = vcombine.low %v1682_v62, %v1683_v18  ;;  %v1718_v32 = vshll.u32 %v1693_v21, 16  ;;  %v1706_v16 = vrot.slane %v1704_v28, 5  ;;  %v2384_v55 = vrot.slane %v1877_v39, 9 }
 0x8e9   : > { %v1711_v29 = vrot.slane %v1709_v25, 4  ;;  %v1714_v30 = vrot.slane %v1712_v26, 5  ;;  %v1701_v31 = vor.u32 %v1700_v24, %v1697_v22  ;;  %v1888_v42 = vrot.slane %v1693_v21, 5 }
 0x8ea   : > { %2576 = vmatmul.mubr.msk.bf16.vlgmr.msra.gmra.mrb[28].mxu0 %vm1758_vm4, %v2377_v27  ;;  %v1720_v5 = vrot.slane %v1718_v32, 5  ;;  %v1885_v47 = vsel %vm3155_vm14, %v2383_v44, %v1884_v45  ;;  %v2802_v44 = vmov (!%p2399_p6), 0.0   ;;  %v2708_v45 = vld [vmem:[%s3328_s10 + $0x8] sm:$0xff] (!%p2399_p6)  }
 0x8eb   : > { %v1702_v33 = vrot.slane %v1701_v31, 4  ;;  %v1715_v34 = vor.u32 %v1714_v30, %v1711_v29  ;;  %v1889_v46 = vsel %vm3155_vm14, %v2384_v55, %v1888_v42  ;;  %2591 = vmatprep.subr.bf16.mxu0 (!%p2399_p6), %v2802_v44 }
 0x8ec   : > { %v2393_v49 = vcombine.low %v1885_v47, %v1889_v46  ;;  %v2400_v47 = vld [vmem:[%s3329_s11] ss:$0 sm:$0xff] (!%p2399_p6) }
 0x8ed   : > { %v1716_v19 = vrot.slane %v1715_v34, 4  ;;  %v1707_v35 = vsel %vm3143_vm11, %v1702_v33, %v1706_v16 }
 0x8ef   : > { %v1721_v6 = vsel %vm3143_vm11, %v1716_v19, %v1720_v5  ;;  %v2010_v19 = vsub.s32 4, %v3084_v12  ;;  %v2016_v5 = vsub.s32 5, %v3084_v12  ;;  %v2707_v12 = vld [vmem:[%s3328_s10] sm:$0xff] (!%p2399_p6)  }
 0x8f0   : > { %v2371_v37 = vcombine.low %v1707_v35, %v1721_v6  ;;  %2592 = vmatpush3.bf16.msra.mxu0 (!%p2399_p6), %v2707_v12 }
 0x8f1   : > { %v2011_v35 = vrot.slane %v3088_v14, %v2010_v19  ;;  %2593 = vmatprep.subr.bf16.mxu0 (!%p2399_p6), %v2802_v44 }
 0x8f2   : > { %2564 = vmatmul.mubr.msk.bf16.vlgmr.msra.gmra.mrb[24].mxu1 %vm1758_vm4, %v2371_v37 }
 0x8f3   : > { %2580 = vmatpush3.bf16.msra.mxu1 %v2699_v36  ;;  %2587 = vmatprep.mubr.msk.bf16.mxu1 %vm2794_vm1, %v2793_v3  ;;  %v2017_v36 = vrot.slane %v3088_v14, %v2016_v5  ;;  %vm2803_vm1 = vmmov (!%p2399_p6), 0  }
 0x8f4   : > { %2581 = vmatprep.subr.bf16.mxu1 %v2793_v3  ;;  %2595 = vmatprep.mubr.msk.bf16.mxu0 (!%p2399_p6), %vm2803_vm1, %v2802_v44 }
 0x8f5   : > { %2594 = vmatpush3.bf16.msra.mxu0 (!%p2399_p6), %v2708_v45 }
 0x8f7   : > { %2582 = vmatpush3.bf16.msra.mxu1 %v2700_v38 }
 0x8f8   : > { %2583 = vmatprep.subr.bf16.mxu1 %v2793_v3 }
 0x8fb   : > { %2584 = vmatpush3.bf16.msra.mxu1 %v2701_v40 }
 0x8fc   : > { %2585 = vmatprep.subr.bf16.mxu1 %v2793_v3 }
 0x8ff   : > { %2586 = vmatpush3.bf16.msra.mxu1 %v2702_v43 }
 0x902   : > { %2588 = vmatmul.mubr.msk.bf16.vlgmr.msra.gmra.mrb[28].mxu1 %vm1758_vm4, %v2393_v49 }
 0x9bd   : > { %v1869_v50 = vpop.f32.mrb[28].mxu0 }
 0x9be   : > { %v2577_v52 = vpop.f32.mrb[29].mxu0 }
 0x9bf   : > { %v1872_v53 = vpop.f32.mrb[30].mxu0 }
 0x9c0   : > { %v2578_v54 = vpop.f32.mrb[31].mxu0 }
 0x9c5   : > { %v1796_v56 = vpop.f32.mrb[24].mxu1 }
 0x9c6   : > { %v1870_v57 = vadd.f32 %v1869_v50, %v1796_v56  ;;  %v2565_v58 = vpop.f32.mrb[25].mxu1 }
 0x9c7   : > { %v1799_v59 = vpop.f32.mrb[26].mxu1 }
 0x9c8   : > { %v1873_v60 = vadd.f32 %v1872_v53, %v1799_v59  ;;  %v2566_v3 = vpop.f32.mrb[27].mxu1 }
 0x9d5   : > { %v1963_v0 = vpop.f32.mrb[28].mxu1 }
 0x9d6   : > { %v1970_v11 = vadd.f32 %v1963_v0, %v1870_v57  ;;  %v2589_v1 = vpop.f32.mrb[29].mxu1 }
 0x9d7   : > { %v1966_v4 = vpop.f32.mrb[30].mxu1 }
 0x9d8   : > { %v1976_v7 = vadd.f32 %v1975_v63, %v1970_v11  ;;  %v1971_v8 = vadd.f32 %v1966_v4, %v1873_v60  ;;  %v2590_v9 = vpop.f32.mrb[31].mxu1 }
 0x9da   : > { %v1977_v10 = vadd.f32 %v1975_v63, %v1971_v8  ;;  %v1978_v13 = vmul.f32 %v1976_v7, %v2983_v20 }
 0x9dc   : > { %v1980_v62 = vadd.f32 %v1978_v13, %v3101_v48  ;;  %v1979_v15 = vmul.f32 %v1977_v10, %v2987_v23 }
 0x9de   : > { %v1982_v2 = vsel %vm659_vm2, %v1980_v62, 0.0  ;;  %v1981_v17 = vadd.f32 %v1979_v15, %v3103_v51 }
 0x9df   : > { %1983 = vadd.xlane.f32.xlu0 %v1982_v2 }
 0x9e0   : > { %v1985_v18 = vsel %vm659_vm2, %v1981_v17, 0.0 }
 0x9e3   : > { %1986 = vadd.xlane.f32.xlu0 %v1985_v18 }
 0xa6c   : > { %v1984_v21 = vpop.xlane.xlu0 %1983 }
 0xa6d   : > { %v1988_v22 = vmul.f32 0.03125, %v1984_v21 }
 0xa6f   : > { %v1990_v24 = vsub.f32 %v1980_v62, %v1988_v22 }
 0xa70   : > { %v1987_v25 = vpop.xlane.xlu0 %1986 }
 0xa71   : > { %v1989_v26 = vmul.f32 0.03125, %v1987_v25  ;;  %v1992_v27 = vmul.f32 %v1990_v24, %v1990_v24 }
 0xa73   : > { %v1991_v28 = vsub.f32 %v1981_v17, %v1989_v26  ;;  %v1994_v29 = vsel %vm659_vm2, %v1992_v27, 0.0 }
 0xa74   : > { %1995 = vadd.xlane.f32.xlu1 %v1994_v29 }
 0xa75   : > { %v1993_v48 = vmul.f32 %v1991_v28, %v1991_v28 }
 0xa77   : > { %v1997_v30 = vsel %vm659_vm2, %v1993_v48, 0.0 }
 0xa78   : > { %1998 = vadd.xlane.f32.xlu1 %v1997_v30 }
 0xb01   : > { %v1996_v31 = vpop.xlane.xlu1 %1995 }
 0xb02   : > { %v2000_v51 = vmul.f32 0.03125, %v1996_v31 }
 0xb04   : > { %v2002_v32 = vadd.f32 1e-05, %v2000_v51 }
 0xb05   : > { %v1999_v33 = vpop.xlane.xlu1 %1998 }
 0xb06   : > { %2703 = vrsqrt.f32 %v2002_v32  ;;  %v2001_v34 = vmul.f32 0.03125, %v1999_v33 }
 0xb08   : > { %v2003_v16 = vadd.f32 1e-05, %v2001_v34 }
 0xb0a   : > { %2705 = vrsqrt.f32 %v2003_v16 }
 0xb10   : > { %v2704_v6 = vpop.eup %2703 }
 0xb11   : > { %v2006_v37 = vmul.f32 %v2704_v6, %v1990_v24 }
 0xb13   : > { %v2012_v38 = vmul.f32 %v2011_v35, %v2006_v37 }
 0xb14   : > { %v2706_v39 = vpop.eup %2705 }
 0xb15   : > { %v2018_v40 = vadd.f32 %v2017_v36, %v2012_v38  ;;  %v2007_v41 = vmul.f32 %v2706_v39, %v1991_v28  ;;  %2025 = sbr.rel (%p2399_p6) target bundleno = 3066 (0xbfa), region = 80 }
 0xb17   : > { %2020 = vst.msk [vmem:[#allocation4] sm:$0xff] %vm659_vm2, %v2018_v40  ;;  %v2013_v55 = vmul.f32 %v2011_v35, %v2007_v41  ;;  %v2026_v14 = vmul.f32 (!%p2399_p6), %v2018_v40, %v2983_v20 }
 0xb19   : > { %v2019_v42 = vadd.f32 %v2017_v36, %v2013_v55  ;;  %2028 = vst.msk [vmem:[#allocation4] sm:$0xff] (!%p2399_p6), %vm659_vm2, %v2026_v14 }
 0xb1b   : > { %2021 = vst.msk [vmem:[#allocation4 + $0x8] sm:$0xff] %vm659_vm2, %v2019_v42  ;;  %v2027_v43 = vmul.f32 (!%p2399_p6), %v2019_v42, %v2987_v23 }
 0xb1d   : > { %2029 = vst.msk [vmem:[#allocation4 + $0x8] sm:$0xff] %vm659_vm2, %v2027_v43  ;;  %v2030_v46 = vpack.c.bf16 %v2027_v43, %v2026_v14 }
 0xb1f   : > { %2596 = vmatmul.mubr.msk.bf16.vlgmr.msra.gmra.mrb[0].mxu0 %vm659_vm2, %v2030_v46 }
 0xbf2   : > { %v2091_v49 = vpop.f32.mrb[0].mxu0 }
 0xbf3   : > { %v2092_v50 = vadd.f32 %v2400_v47, %v2091_v49  ;;  %v2597_v52 = vpop.f32.mrb[1].mxu0 }
 0xbf4   : > { %v2094_v53 = vpop.f32.mrb[2].mxu0 }
 0xbf5   : > { %v2098_v54 = vmul.f32 %v2092_v50, %v2983_v20  ;;  %v2095_v56 = vadd.f32 %v2400_v47, %v2094_v53  ;;  %v2598_v57 = vpop.f32.mrb[3].mxu0 }
 0xbf7   : > { %2100 = vst.msk [vmem:[#allocation6] sm:$0xff] %vm835_vm6, %v2098_v54  ;;  %v2099_v58 = vmul.f32 %v2095_v56, %v2987_v23 }
 0xbf9   : > { %2101 = vst.msk [vmem:[#allocation6 + $0x8] sm:$0xff] %vm835_vm6, %v2099_v58 }
 0xbfa PF: > { %s3350_s21 = sld [smem:[#allocation11_spill]]  ;;  %s2804_s29 = smov [#allocation4]  }
 0xbfb   : > { %s2111_s12 = sshll.u32 %s2804_s29, 4  ;;  %s2112_s12 = int_to_ptr.vmem [resolvable:$true] %s2111_s12 }
 0xbfc   : > { %s2709_s27 = scalar_lea.vmem %s2112_s12, 256  ;;  %p2716_p11 = scmp.lt.s32.totalorder %s2112_s12, %s2112_s12 }
 0xbfd   : > { %p2710_p8 = scmp.ne.s32.totalorder %s2112_s12, %s2709_s27  ;;  %p2717_p12 = scmp.lt.s32.totalorder %s2709_s27, %s2709_s27 }
 0xbff   : > { %p2718_p13 = por %p2717_p12, %p2716_p11 }
 0xc00   : > { %s3351_s14 = sadd.s32 4294967295, %s3350_s21  }
 0xc01   : > { %p3261_p7 = scmp.eq.s32.totalorder %s3351_s14, 1 }
 0xc03   : > { %p2711_p9 = pnand %p2710_p8, %p3261_p7 }
 0xc05   : > { %p2712_p10 = pneg %p2711_p9 }
 0xc07   : > { %p2719_p0 = pnand %p2718_p13, %p2712_p10 }
 0xc09   : > { %2722 = shalt.err (!%p2719_p0)
}
 0xc0a   : > { %s3353_s20 = sld [smem:[#allocation13_spill]] }
 0xc10   : > { %s2723_s24 = scalar_lea.hbm %s3353_s20, 256 }
 0xc11   : > { %p2724_p1 = scmp.ne.s32.totalorder %s3353_s20, %s2723_s24  ;;  %p2729_p4 = scmp.lt.u32.totalorder %s2723_s24, %s3353_s20 }
 0xc13   : > { %p2725_p2 = pnand %p2724_p1, %p3261_p7 }
 0xc15   : > { %p2726_p3 = pneg %p2725_p2 }
 0xc17   : > { %p2731_p5 = pnand %p2729_p4, %p2726_p3 }
 0xc19   : > { %2734 = shalt.err (!%p2731_p5)
}
 0xc1a   : > { %s2805_s15 = smov 128   ;;  %s2806_s18 = smov 8  }
 0xc1b   : > { %2602 = dma.vmem_to_hbm [thread:$0]  (%p3261_p7), %s2112_s12, 256, %s3353_s20, [#allocation5], %s2805_s15, %s2805_s15, %s2806_s18  }
 0xc1c   : > { %s2807_s19 = smov [#allocation6]  }
 0xc1d   : > { %s2127_s21 = sshll.u32 %s2807_s19, 4  ;;  %s2128_s21 = int_to_ptr.vmem [resolvable:$true] %s2127_s21 }
 0xc1e   : > { %s2735_s14 = scalar_lea.vmem %s2128_s21, 256  ;;  %p2742_p10 = scmp.lt.s32.totalorder %s2128_s21, %s2128_s21 }
 0xc1f   : > { %p2736_p6 = scmp.ne.s32.totalorder %s2128_s21, %s2735_s14  ;;  %p2743_p11 = scmp.lt.s32.totalorder %s2735_s14, %s2735_s14 }
 0xc21   : > { %p2737_p8 = pnand %p2736_p6, %p3261_p7  ;;  %p2744_p12 = por %p2743_p11, %p2742_p10 }
 0xc23   : > { %p2738_p9 = pneg %p2737_p8 }
 0xc25   : > { %p2745_p13 = pnand %p2744_p12, %p2738_p9 }
 0xc27   : > { %2748 = shalt.err (!%p2745_p13)
}
 0xc28   : > { %s3354_s28 = sld [smem:[#allocation14_spill]] }
 0xc2e   : > { %s2749_s17 = scalar_lea.hbm %s3354_s28, 256 }
 0xc2f   : > { %p2750_p0 = scmp.ne.s32.totalorder %s3354_s28, %s2749_s17  ;;  %p2755_p3 = scmp.lt.u32.totalorder %s2749_s17, %s3354_s28 }
 0xc31   : > { %p2751_p1 = pnand %p2750_p0, %p3261_p7 }
 0xc33   : > { %p2752_p2 = pneg %p2751_p1 }
 0xc35   : > { %p2757_p4 = pnand %p2755_p3, %p2752_p2 }
 0xc37   : > { %2760 = shalt.err (!%p2757_p4)
}
 0xc38   : > { %2604 = dma.vmem_to_hbm [thread:$0]  (%p3261_p7), %s2128_s21, 256, %s3354_s28, [#allocation7], %s2805_s15, %s2805_s15, %s2806_s18  }
 0xc39   : > { %2774 = dma.done.wait (%p3261_p7), [#allocation5], 256  }
 0xc3a   : > { %2776 = vsyncadd (%p3261_p7), [#allocation5], 4294967040 }
 0xc3b   : > { %2778 = dma.done.wait (%p3261_p7), [#allocation7], 256  }
 0xc3c   : > { %2780 = vsyncadd (%p3261_p7), [#allocation7], 4294967040 }
 0xc3d PF: > { %s3355_s22 = sld [smem:[#allocation11_spill]]  ;;  %s3356_s25 = sld [smem:[#allocation10_spill]] }
 0xc3e   : > { %s3357_s26 = sld [smem:[#allocation12_spill]] }
 0xc43   : > { %s26_s27 = sadd.s32 1, %s3355_s22  }
 0xc44   : > { %p23_p5 = scmp.ge.s32.totalorder %s26_s27, 4  }
 0xc46   :  { %25 = sbr.rel (!%p23_p5) target bundleno = 6 (0x6), region = 148 }
 0xc4d   :  { %2147 = vsyncpa [#allocation5], 1 }
 0xc4e   :  { %2149 = vsyncpa [#allocation5 + $0x1], 1 }
 0xc4f   :  { %2150 = vsyncpa [#allocation7], 1 }

</bundles_post_ra>
